<compile_context>
chip_gen: v5e
topology: v5e:2x2
jax: 0.10.0
libtpu: 0.0.40
codegen_flags: <defaults>
</compile_context>

<pallas_src>
import functools

import numpy as np
import jax
import jax.numpy as jnp
from jax import lax
from jax.experimental import pallas as pl
from jax.experimental.pallas import tpu as pltpu

LEAKY_SLOPE = 0.1
BN_EPS = 1e-5
LANE = 128


def _round_up(x, m):
    return (x + m - 1) // m * m


def _vmem_limit_bytes():
    # ~75% of physical VMEM: ~48 MiB on v7x (64 MiB/TC), ~96 MiB on v5e/v6e (128 MiB).
    cap = None
    try:
        cap = getattr(pltpu.get_tpu_info(), "vmem_capacity_bytes", None)
    except Exception:
        cap = None
    if not cap:
        return 48 * 1024 * 1024
    return int(min(max(cap * 3 // 4, 32 * 1024 * 1024), 100 * 1024 * 1024))


def _pick_tile_oh(oh, other_parallel):
    # Largest row tile (<= 8) dividing OH while keeping >= 2 total grid steps so
    # both v7x TensorCores get work.
    for t in (8, 4, 2, 1):
        if oh % t == 0 and (oh // t) * max(other_parallel, 1) >= 2:
            return t
    return 1


def _conv_bn_lrelu_kernel(e_ref, od_ref, en_ref, wl_ref, wr_ref, b_ref, out_ref,
                          *, toh, ow, cin):
    # e_ref : (1, toh, 1, PW, 2*Cin) bf16  -- even padded rows 2*oy   (width-paired)
    # od_ref: (1, toh, 1, PW, 2*Cin) bf16  -- odd  padded rows 2*oy+1
    # en_ref: (1, 1,   1, PW, 2*Cin) bf16  -- even padded row  2*(oy0+toh) (halo row)
    # wl_ref: (3, 2*Cin, tile_n) bf16      -- taps kx=0,1 stacked, BN scale folded
    # wr_ref: (3, Cin,   tile_n) bf16      -- tap  kx=2,            BN scale folded
    # b_ref : (1, tile_n) f32              -- folded BN bias
    # out_ref:(1, toh, OW, tile_n) bf16    -- lane-dense output tile
    bias = b_ref[...]
    for t in range(toh):  # static unroll over the rows of this tile
        r_top = e_ref[0, t, 0]                                   # padded row 2*oy
        r_mid = od_ref[0, t, 0]                                  # padded row 2*oy + 1
        r_bot = e_ref[0, t + 1, 0] if t + 1 < toh else en_ref[0, 0, 0]  # row 2*oy + 2

        # kx = 0,1 (full 2*Cin width-pair) and kx = 2 (first Cin lanes of next pair).
        acc = jnp.dot(r_top[:ow, :], wl_ref[0], preferred_element_type=jnp.float32)
        acc += jnp.dot(r_mid[:ow, :], wl_ref[1], preferred_element_type=jnp.float32)
        acc += jnp.dot(r_bot[:ow, :], wl_ref[2], preferred_element_type=jnp.float32)
        acc += jnp.dot(r_top[1:ow + 1, :cin], wr_ref[0], preferred_element_type=jnp.float32)
        acc += jnp.dot(r_mid[1:ow + 1, :cin], wr_ref[1], preferred_element_type=jnp.float32)
        acc += jnp.dot(r_bot[1:ow + 1, :cin], wr_ref[2], preferred_element_type=jnp.float32)

        y = acc + bias
        y = jnp.maximum(y, LEAKY_SLOPE * y)                       # LeakyReLU(0.1)
        out_ref[0, t] = y.astype(out_ref.dtype)                   # bf16 store


@functools.partial(jax.jit, static_argnames=("stride",))
def darknet_conv(x_nchw, conv_w, bn_gamma, bn_beta, bn_mean, bn_var, *, stride=2):
    if stride != 2:
        # TODO(synk): general-stride path (DarknetConv is the stride-2 downsampler).
        raise NotImplementedError("fused DarknetConv kernel implements stride=2 only")

    N, Cin, H, W = x_nchw.shape
    Cout = conv_w.shape[0]
    OH = (H - 1) // 2 + 1
    OW = (W - 1) // 2 + 1
    Cp = _round_up(Cout, LANE)

    # ---- Cout tiling (caps resident-weight VMEM on deep layers) ----
    if Cp <= 512:
        tile_n = Cp
    elif Cp % 512 == 0:
        tile_n = 512
    elif Cp % 256 == 0:
        tile_n = 256
    else:
        tile_n = 128
    nct = Cp // tile_n

    toh = _pick_tile_oh(OH, N * nct)
    n_row_tiles = OH // toh

    # ---- input repack: one NHWC bf16 materialization, NO 9x im2col matrix ----
    Hp = H + 2 + ((H + 2) % 2)            # padded height, rounded up to even
    Wp = W + 2 + ((W + 2) % 2)            # padded width,  rounded up to even
    x = jnp.transpose(x_nchw, (0, 2, 3, 1)).astype(jnp.bfloat16)           # NHWC bf16
    xp = jnp.pad(x, ((0, 0), (1, Hp - H - 1), (1, Wp - W - 1), (0, 0)))
    PH, PW = Hp // 2, Wp // 2
    two_cin = 2 * Cin
    # (N, row-pair, row-in-pair, col-pair, 2*Cin): pure reshape, no data movement.
    x2 = xp.reshape(N, PH, 2, PW, two_cin)

    # ---- weights: fold BN scale, pack taps, pad Cout -> lane-dense Cp ----
    scale = (bn_gamma / jnp.sqrt(bn_var + BN_EPS)).astype(jnp.float32)     # (Cout,)
    bias = (bn_beta - bn_mean * scale).astype(jnp.float32)                 # (Cout,)
    w = conv_w.astype(jnp.float32) * scale[:, None, None, None]            # fold scale
    w = jnp.transpose(w, (2, 3, 1, 0)).astype(jnp.bfloat16)                # (3,3,Cin,Cout)
    w = jnp.pad(w, ((0, 0), (0, 0), (0, 0), (0, Cp - Cout)))
    wl = jnp.concatenate([w[:, 0], w[:, 1]], axis=1)                       # (3, 2*Cin, Cp)
    wr = w[:, 2]                                                           # (3, Cin,  Cp)
    bias = jnp.pad(bias, (0, Cp - Cout)).reshape(1, Cp)

    kernel = functools.partial(_conv_bn_lrelu_kernel, toh=toh, ow=OW, cin=Cin)

    cost = pl.CostEstimate(
        flops=2 * N * OH * OW * 9 * Cin * Cout,
        transcendentals=0,
        bytes_accessed=(x2.size * 2 + wl.size * 2 + wr.size * 2
                        + bias.size * 4 + N * OH * OW * Cp * 2),
    )

    out = pl.pallas_call(
        kernel,
        out_shape=jax.ShapeDtypeStruct((N, OH, OW, Cp), jnp.bfloat16),
        grid=(N, nct, n_row_tiles),
        in_specs=[
            # even rows 2*oy of this row tile
            pl.BlockSpec((1, toh, 1, PW, two_cin), lambda n, j, r: (n, r, 0, 0, 0)),
            # odd rows 2*oy+1 of this row tile
            pl.BlockSpec((1, toh, 1, PW, two_cin), lambda n, j, r: (n, r, 1, 0, 0)),
            # single halo row 2*(oy0+toh) (always exists: PH == OH+1)
            pl.BlockSpec((1, 1, 1, PW, two_cin),
                         lambda n, j, r: (n, (r + 1) * toh, 0, 0, 0)),
            # weights / bias: block index constant over fastest axis -> no re-DMA
            pl.BlockSpec((3, two_cin, tile_n), lambda n, j, r: (0, 0, j)),
            pl.BlockSpec((3, Cin, tile_n), lambda n, j, r: (0, 0, j)),
            pl.BlockSpec((1, tile_n), lambda n, j, r: (0, j)),
        ],
        out_specs=pl.BlockSpec((1, toh, OW, tile_n), lambda n, j, r: (n, r, 0, j)),
        compiler_params=pltpu.CompilerParams(
            dimension_semantics=("parallel", "parallel", "parallel"),
            vmem_limit_bytes=_vmem_limit_bytes(),
        ),
        cost_estimate=cost,
    )(x2, x2, x2, wl, wr, bias)

    out = out[..., :Cout]                       # drop padded channels
    return jnp.transpose(out, (0, 3, 1, 2))     # NCHW (bf16; accuracy is bf16-limited)


def _reference(x_nchw, conv_w, gamma, beta, mean, var, *, stride=2):
    y = lax.conv_general_dilated(
        x_nchw, conv_w, window_strides=(stride, stride), padding=((1, 1), (1, 1)),
        dimension_numbers=("NCHW", "OIHW", "NCHW"),
    )
    s = gamma / jnp.sqrt(var + BN_EPS)
    y = y * s[None, :, None, None] + (beta - mean * s)[None, :, None, None]
    return jnp.where(y >= 0, y, LEAKY_SLOPE * y)


if __name__ == "__main__":
    # DarknetConv(conv_num=1, nFilter1=4, nFilter2=8, stride=2)
    N, Cin, Cout, H, W = 2, 4, 8, 16, 16

    key = jax.random.PRNGKey(0)
    kx, kw, kg, kb, km, kv = jax.random.split(key, 6)

    x = jax.random.normal(kx, (N, Cin, H, W), dtype=jnp.float32)
    conv_w = jax.random.normal(kw, (Cout, Cin, 3, 3), dtype=jnp.float32) * 0.1
    bn_gamma = 0.5 + jax.random.uniform(kg, (Cout,), dtype=jnp.float32)
    bn_beta = jax.random.normal(kb, (Cout,), dtype=jnp.float32) * 0.1
    bn_mean = jax.random.normal(km, (Cout,), dtype=jnp.float32) * 0.1
    bn_var = 0.5 + jax.random.uniform(kv, (Cout,), dtype=jnp.float32)

    out = darknet_conv(x, conv_w, bn_gamma, bn_beta, bn_mean, bn_var, stride=2)
    out = jax.block_until_ready(out)

    ref = _reference(x, conv_w, bn_gamma, bn_beta, bn_mean, bn_var, stride=2)
    # bf16 inputs/weights/output with f32 accumulation -> bf16-level tolerance.
    np.testing.assert_allclose(
        np.asarray(out.astype(jnp.float32)), np.asarray(ref), rtol=3e-2, atol=3e-2
    )

    print("KERNEL_OK")
</pallas_src>

<mosaic_0001>
module attributes {stable_mosaic.version = 11 : i64} {
  func.func @_conv_bn_lrelu_kernel(%arg0: i32, %arg1: i32, %arg2: i32, %arg3: memref<1x8x1x9x8xbf16, #tpu.memory_space<vmem>>, %arg4: memref<1x8x1x9x8xbf16, #tpu.memory_space<vmem>>, %arg5: memref<1x1x1x9x8xbf16, #tpu.memory_space<vmem>>, %arg6: memref<3x8x128xbf16, #tpu.memory_space<vmem>>, %arg7: memref<3x4x128xbf16, #tpu.memory_space<vmem>>, %arg8: memref<1x128xf32, #tpu.memory_space<vmem>>, %arg9: memref<1x8x8x128xbf16, #tpu.memory_space<vmem>>) attributes {dimension_semantics = [#tpu.dimension_semantics<parallel>, #tpu.dimension_semantics<parallel>, #tpu.dimension_semantics<parallel>], iteration_bounds = array<i64: 2, 1, 1>, scalar_prefetch = 0 : i64, scratch_operands = 0 : i64, tpu.core_type = #tpu.core_type<tc>, window_params = [{transform_indices = @transform_0, window_bounds = array<i64: 1, 8, 1, 9, 8>}, {transform_indices = @transform_1, window_bounds = array<i64: 1, 8, 1, 9, 8>}, {transform_indices = @transform_2, window_bounds = array<i64: 1, 1, 1, 9, 8>}, {transform_indices = @transform_3, window_bounds = array<i64: 3, 8, 128>}, {transform_indices = @transform_4, window_bounds = array<i64: 3, 4, 128>}, {transform_indices = @transform_5, window_bounds = array<i64: 1, 128>}, {transform_indices = @transform_6, window_bounds = array<i64: 1, 8, 8, 128>}]} {
    %c0 = arith.constant 0 : index
    %c0_0 = arith.constant 0 : index
    %0 = vector.load %arg8[%c0, %c0_0] : memref<1x128xf32, #tpu.memory_space<vmem>>, vector<1x128xf32>
    %c0_1 = arith.constant 0 : index
    %c0_2 = arith.constant 0 : index
    %c0_3 = arith.constant 0 : index
    %c0_4 = arith.constant 0 : index
    %c0_5 = arith.constant 0 : index
    %1 = vector.load %arg3[%c0_1, %c0_2, %c0_3, %c0_4, %c0_5] : memref<1x8x1x9x8xbf16, #tpu.memory_space<vmem>>, vector<1x1x1x9x8xbf16>
    %2 = vector.shape_cast %1 : vector<1x1x1x9x8xbf16> to vector<9x8xbf16>
    %c0_6 = arith.constant 0 : index
    %c0_7 = arith.constant 0 : index
    %c0_8 = arith.constant 0 : index
    %c0_9 = arith.constant 0 : index
    %c0_10 = arith.constant 0 : index
    %3 = vector.load %arg4[%c0_6, %c0_7, %c0_8, %c0_9, %c0_10] : memref<1x8x1x9x8xbf16, #tpu.memory_space<vmem>>, vector<1x1x1x9x8xbf16>
    %4 = vector.shape_cast %3 : vector<1x1x1x9x8xbf16> to vector<9x8xbf16>
    %c0_11 = arith.constant 0 : index
    %c1 = arith.constant 1 : index
    %c0_12 = arith.constant 0 : index
    %c0_13 = arith.constant 0 : index
    %c0_14 = arith.constant 0 : index
    %5 = vector.load %arg3[%c0_11, %c1, %c0_12, %c0_13, %c0_14] : memref<1x8x1x9x8xbf16, #tpu.memory_space<vmem>>, vector<1x1x1x9x8xbf16>
    %6 = vector.shape_cast %5 : vector<1x1x1x9x8xbf16> to vector<9x8xbf16>
    %7 = vector.extract_strided_slice %2 {offsets = [0, 0], sizes = [8, 8], strides = [1, 1]} : vector<9x8xbf16> to vector<8x8xbf16>
    %c0_15 = arith.constant 0 : index
    %c0_16 = arith.constant 0 : index
    %c0_17 = arith.constant 0 : index
    %8 = vector.load %arg6[%c0_15, %c0_16, %c0_17] : memref<3x8x128xbf16, #tpu.memory_space<vmem>>, vector<1x8x128xbf16>
    %9 = vector.shape_cast %8 : vector<1x8x128xbf16> to vector<8x128xbf16>
    %cst = arith.constant dense<0.000000e+00> : vector<8x128xf32>
    %10 = tpu.matmul %7, %9, %cst {dimension_numbers = #tpu.dot_dimension_numbers<[1], [0], [0], [1], [0, 0, 1, 1], [], []>} : vector<8x8xbf16>, vector<8x128xbf16>, vector<8x128xf32> -> vector<8x128xf32>
    %11 = vector.extract_strided_slice %4 {offsets = [0, 0], sizes = [8, 8], strides = [1, 1]} : vector<9x8xbf16> to vector<8x8xbf16>
    %c1_18 = arith.constant 1 : index
    %c0_19 = arith.constant 0 : index
    %c0_20 = arith.constant 0 : index
    %12 = vector.load %arg6[%c1_18, %c0_19, %c0_20] : memref<3x8x128xbf16, #tpu.memory_space<vmem>>, vector<1x8x128xbf16>
    %13 = vector.shape_cast %12 : vector<1x8x128xbf16> to vector<8x128xbf16>
    %cst_21 = arith.constant dense<0.000000e+00> : vector<8x128xf32>
    %14 = tpu.matmul %11, %13, %cst_21 {dimension_numbers = #tpu.dot_dimension_numbers<[1], [0], [0], [1], [0, 0, 1, 1], [], []>} : vector<8x8xbf16>, vector<8x128xbf16>, vector<8x128xf32> -> vector<8x128xf32>
    %15 = arith.addf %10, %14 : vector<8x128xf32>
    %16 = vector.extract_strided_slice %6 {offsets = [0, 0], sizes = [8, 8], strides = [1, 1]} : vector<9x8xbf16> to vector<8x8xbf16>
    %c2 = arith.constant 2 : index
    %c0_22 = arith.constant 0 : index
    %c0_23 = arith.constant 0 : index
    %17 = vector.load %arg6[%c2, %c0_22, %c0_23] : memref<3x8x128xbf16, #tpu.memory_space<vmem>>, vector<1x8x128xbf16>
    %18 = vector.shape_cast %17 : vector<1x8x128xbf16> to vector<8x128xbf16>
    %cst_24 = arith.constant dense<0.000000e+00> : vector<8x128xf32>
    %19 = tpu.matmul %16, %18, %cst_24 {dimension_numbers = #tpu.dot_dimension_numbers<[1], [0], [0], [1], [0, 0, 1, 1], [], []>} : vector<8x8xbf16>, vector<8x128xbf16>, vector<8x128xf32> -> vector<8x128xf32>
    %20 = arith.addf %15, %19 : vector<8x128xf32>
    %21 = vector.extract_strided_slice %2 {offsets = [1, 0], sizes = [8, 4], strides = [1, 1]} : vector<9x8xbf16> to vector<8x4xbf16>
    %c0_25 = arith.constant 0 : index
    %c0_26 = arith.constant 0 : index
    %c0_27 = arith.constant 0 : index
    %22 = vector.load %arg7[%c0_25, %c0_26, %c0_27] : memref<3x4x128xbf16, #tpu.memory_space<vmem>>, vector<1x4x128xbf16>
    %23 = vector.shape_cast %22 : vector<1x4x128xbf16> to vector<4x128xbf16>
    %cst_28 = arith.constant dense<0.000000e+00> : vector<8x128xf32>
    %24 = tpu.matmul %21, %23, %cst_28 {dimension_numbers = #tpu.dot_dimension_numbers<[1], [0], [0], [1], [0, 0, 1, 1], [], []>} : vector<8x4xbf16>, vector<4x128xbf16>, vector<8x128xf32> -> vector<8x128xf32>
    %25 = arith.addf %20, %24 : vector<8x128xf32>
    %26 = vector.extract_strided_slice %4 {offsets = [1, 0], sizes = [8, 4], strides = [1, 1]} : vector<9x8xbf16> to vector<8x4xbf16>
    %c1_29 = arith.constant 1 : index
    %c0_30 = arith.constant 0 : index
    %c0_31 = arith.constant 0 : index
    %27 = vector.load %arg7[%c1_29, %c0_30, %c0_31] : memref<3x4x128xbf16, #tpu.memory_space<vmem>>, vector<1x4x128xbf16>
    %28 = vector.shape_cast %27 : vector<1x4x128xbf16> to vector<4x128xbf16>
    %cst_32 = arith.constant dense<0.000000e+00> : vector<8x128xf32>
    %29 = tpu.matmul %26, %28, %cst_32 {dimension_numbers = #tpu.dot_dimension_numbers<[1], [0], [0], [1], [0, 0, 1, 1], [], []>} : vector<8x4xbf16>, vector<4x128xbf16>, vector<8x128xf32> -> vector<8x128xf32>
    %30 = arith.addf %25, %29 : vector<8x128xf32>
    %31 = vector.extract_strided_slice %6 {offsets = [1, 0], sizes = [8, 4], strides = [1, 1]} : vector<9x8xbf16> to vector<8x4xbf16>
    %c2_33 = arith.constant 2 : index
    %c0_34 = arith.constant 0 : index
    %c0_35 = arith.constant 0 : index
    %32 = vector.load %arg7[%c2_33, %c0_34, %c0_35] : memref<3x4x128xbf16, #tpu.memory_space<vmem>>, vector<1x4x128xbf16>
    %33 = vector.shape_cast %32 : vector<1x4x128xbf16> to vector<4x128xbf16>
    %cst_36 = arith.constant dense<0.000000e+00> : vector<8x128xf32>
    %34 = tpu.matmul %31, %33, %cst_36 {dimension_numbers = #tpu.dot_dimension_numbers<[1], [0], [0], [1], [0, 0, 1, 1], [], []>} : vector<8x4xbf16>, vector<4x128xbf16>, vector<8x128xf32> -> vector<8x128xf32>
    %35 = arith.addf %30, %34 : vector<8x128xf32>
    %36 = vector.broadcast %0 : vector<1x128xf32> to vector<8x128xf32>
    %37 = arith.addf %35, %36 : vector<8x128xf32>
    %cst_37 = arith.constant 1.000000e-01 : f32
    %38 = vector.broadcast %cst_37 : f32 to vector<8x128xf32>
    %39 = arith.mulf %38, %37 : vector<8x128xf32>
    %40 = arith.maximumf %37, %39 : vector<8x128xf32>
    %41 = arith.truncf %40 : vector<8x128xf32> to vector<8x128xbf16>
    %c0_38 = arith.constant 0 : index
    %c0_39 = arith.constant 0 : index
    %c0_40 = arith.constant 0 : index
    %c0_41 = arith.constant 0 : index
    %42 = vector.load %arg9[%c0_38, %c0_39, %c0_40, %c0_41] : memref<1x8x8x128xbf16, #tpu.memory_space<vmem>>, vector<1x1x8x128xbf16>
    %43 = vector.shape_cast %42 : vector<1x1x8x128xbf16> to vector<8x128xbf16>
    %44 = vector.shape_cast %41 : vector<8x128xbf16> to vector<1x1x8x128xbf16>
    tpu.vector_store %arg9[%c0_38, %c0_39, %c0_40, %c0_41], %44 {strides = array<i32>} : memref<1x8x8x128xbf16, #tpu.memory_space<vmem>>, vector<1x1x8x128xbf16>,
    %c0_42 = arith.constant 0 : index
    %c1_43 = arith.constant 1 : index
    %c0_44 = arith.constant 0 : index
    %c0_45 = arith.constant 0 : index
    %c0_46 = arith.constant 0 : index
    %45 = vector.load %arg3[%c0_42, %c1_43, %c0_44, %c0_45, %c0_46] : memref<1x8x1x9x8xbf16, #tpu.memory_space<vmem>>, vector<1x1x1x9x8xbf16>
    %46 = vector.shape_cast %45 : vector<1x1x1x9x8xbf16> to vector<9x8xbf16>
    %c0_47 = arith.constant 0 : index
    %c1_48 = arith.constant 1 : index
    %c0_49 = arith.constant 0 : index
    %c0_50 = arith.constant 0 : index
    %c0_51 = arith.constant 0 : index
    %47 = vector.load %arg4[%c0_47, %c1_48, %c0_49, %c0_50, %c0_51] : memref<1x8x1x9x8xbf16, #tpu.memory_space<vmem>>, vector<1x1x1x9x8xbf16>
    %48 = vector.shape_cast %47 : vector<1x1x1x9x8xbf16> to vector<9x8xbf16>
    %c0_52 = arith.constant 0 : index
    %c2_53 = arith.constant 2 : index
    %c0_54 = arith.constant 0 : index
    %c0_55 = arith.constant 0 : index
    %c0_56 = arith.constant 0 : index
    %49 = vector.load %arg3[%c0_52, %c2_53, %c0_54, %c0_55, %c0_56] : memref<1x8x1x9x8xbf16, #tpu.memory_space<vmem>>, vector<1x1x1x9x8xbf16>
    %50 = vector.shape_cast %49 : vector<1x1x1x9x8xbf16> to vector<9x8xbf16>
    %51 = vector.extract_strided_slice %46 {offsets = [0, 0], sizes = [8, 8], strides = [1, 1]} : vector<9x8xbf16> to vector<8x8xbf16>
    %c0_57 = arith.constant 0 : index
    %c0_58 = arith.constant 0 : index
    %c0_59 = arith.constant 0 : index
    %52 = vector.load %arg6[%c0_57, %c0_58, %c0_59] : memref<3x8x128xbf16, #tpu.memory_space<vmem>>, vector<1x8x128xbf16>
    %53 = vector.shape_cast %52 : vector<1x8x128xbf16> to vector<8x128xbf16>
    %cst_60 = arith.constant dense<0.000000e+00> : vector<8x128xf32>
    %54 = tpu.matmul %51, %53, %cst_60 {dimension_numbers = #tpu.dot_dimension_numbers<[1], [0], [0], [1], [0, 0, 1, 1], [], []>} : vector<8x8xbf16>, vector<8x128xbf16>, vector<8x128xf32> -> vector<8x128xf32>
    %55 = vector.extract_strided_slice %48 {offsets = [0, 0], sizes = [8, 8], strides = [1, 1]} : vector<9x8xbf16> to vector<8x8xbf16>
    %c1_61 = arith.constant 1 : index
    %c0_62 = arith.constant 0 : index
    %c0_63 = arith.constant 0 : index
    %56 = vector.load %arg6[%c1_61, %c0_62, %c0_63] : memref<3x8x128xbf16, #tpu.memory_space<vmem>>, vector<1x8x128xbf16>
    %57 = vector.shape_cast %56 : vector<1x8x128xbf16> to vector<8x128xbf16>
    %cst_64 = arith.constant dense<0.000000e+00> : vector<8x128xf32>
    %58 = tpu.matmul %55, %57, %cst_64 {dimension_numbers = #tpu.dot_dimension_numbers<[1], [0], [0], [1], [0, 0, 1, 1], [], []>} : vector<8x8xbf16>, vector<8x128xbf16>, vector<8x128xf32> -> vector<8x128xf32>
    %59 = arith.addf %54, %58 : vector<8x128xf32>
    %60 = vector.extract_strided_slice %50 {offsets = [0, 0], sizes = [8, 8], strides = [1, 1]} : vector<9x8xbf16> to vector<8x8xbf16>
    %c2_65 = arith.constant 2 : index
    %c0_66 = arith.constant 0 : index
    %c0_67 = arith.constant 0 : index
    %61 = vector.load %arg6[%c2_65, %c0_66, %c0_67] : memref<3x8x128xbf16, #tpu.memory_space<vmem>>, vector<1x8x128xbf16>
    %62 = vector.shape_cast %61 : vector<1x8x128xbf16> to vector<8x128xbf16>
    %cst_68 = arith.constant dense<0.000000e+00> : vector<8x128xf32>
    %63 = tpu.matmul %60, %62, %cst_68 {dimension_numbers = #tpu.dot_dimension_numbers<[1], [0], [0], [1], [0, 0, 1, 1], [], []>} : vector<8x8xbf16>, vector<8x128xbf16>, vector<8x128xf32> -> vector<8x128xf32>
    %64 = arith.addf %59, %63 : vector<8x128xf32>
    %65 = vector.extract_strided_slice %46 {offsets = [1, 0], sizes = [8, 4], strides = [1, 1]} : vector<9x8xbf16> to vector<8x4xbf16>
    %c0_69 = arith.constant 0 : index
    %c0_70 = arith.constant 0 : index
    %c0_71 = arith.constant 0 : index
    %66 = vector.load %arg7[%c0_69, %c0_70, %c0_71] : memref<3x4x128xbf16, #tpu.memory_space<vmem>>, vector<1x4x128xbf16>
    %67 = vector.shape_cast %66 : vector<1x4x128xbf16> to vector<4x128xbf16>
    %cst_72 = arith.constant dense<0.000000e+00> : vector<8x128xf32>
    %68 = tpu.matmul %65, %67, %cst_72 {dimension_numbers = #tpu.dot_dimension_numbers<[1], [0], [0], [1], [0, 0, 1, 1], [], []>} : vector<8x4xbf16>, vector<4x128xbf16>, vector<8x128xf32> -> vector<8x128xf32>
    %69 = arith.addf %64, %68 : vector<8x128xf32>
    %70 = vector.extract_strided_slice %48 {offsets = [1, 0], sizes = [8, 4], strides = [1, 1]} : vector<9x8xbf16> to vector<8x4xbf16>
    %c1_73 = arith.constant 1 : index
    %c0_74 = arith.constant 0 : index
    %c0_75 = arith.constant 0 : index
    %71 = vector.load %arg7[%c1_73, %c0_74, %c0_75] : memref<3x4x128xbf16, #tpu.memory_space<vmem>>, vector<1x4x128xbf16>
    %72 = vector.shape_cast %71 : vector<1x4x128xbf16> to vector<4x128xbf16>
    %cst_76 = arith.constant dense<0.000000e+00> : vector<8x128xf32>
    %73 = tpu.matmul %70, %72, %cst_76 {dimension_numbers = #tpu.dot_dimension_numbers<[1], [0], [0], [1], [0, 0, 1, 1], [], []>} : vector<8x4xbf16>, vector<4x128xbf16>, vector<8x128xf32> -> vector<8x128xf32>
    %74 = arith.addf %69, %73 : vector<8x128xf32>
    %75 = vector.extract_strided_slice %50 {offsets = [1, 0], sizes = [8, 4], strides = [1, 1]} : vector<9x8xbf16> to vector<8x4xbf16>
    %c2_77 = arith.constant 2 : index
    %c0_78 = arith.constant 0 : index
    %c0_79 = arith.constant 0 : index
    %76 = vector.load %arg7[%c2_77, %c0_78, %c0_79] : memref<3x4x128xbf16, #tpu.memory_space<vmem>>, vector<1x4x128xbf16>
    %77 = vector.shape_cast %76 : vector<1x4x128xbf16> to vector<4x128xbf16>
    %cst_80 = arith.constant dense<0.000000e+00> : vector<8x128xf32>
    %78 = tpu.matmul %75, %77, %cst_80 {dimension_numbers = #tpu.dot_dimension_numbers<[1], [0], [0], [1], [0, 0, 1, 1], [], []>} : vector<8x4xbf16>, vector<4x128xbf16>, vector<8x128xf32> -> vector<8x128xf32>
    %79 = arith.addf %74, %78 : vector<8x128xf32>
    %80 = vector.broadcast %0 : vector<1x128xf32> to vector<8x128xf32>
    %81 = arith.addf %79, %80 : vector<8x128xf32>
    %cst_81 = arith.constant 1.000000e-01 : f32
    %82 = vector.broadcast %cst_81 : f32 to vector<8x128xf32>
    %83 = arith.mulf %82, %81 : vector<8x128xf32>
    %84 = arith.maximumf %81, %83 : vector<8x128xf32>
    %85 = arith.truncf %84 : vector<8x128xf32> to vector<8x128xbf16>
    %c0_82 = arith.constant 0 : index
    %c1_83 = arith.constant 1 : index
    %c0_84 = arith.constant 0 : index
    %c0_85 = arith.constant 0 : index
    %86 = vector.load %arg9[%c0_82, %c1_83, %c0_84, %c0_85] : memref<1x8x8x128xbf16, #tpu.memory_space<vmem>>, vector<1x1x8x128xbf16>
    %87 = vector.shape_cast %86 : vector<1x1x8x128xbf16> to vector<8x128xbf16>
    %88 = vector.shape_cast %85 : vector<8x128xbf16> to vector<1x1x8x128xbf16>
    tpu.vector_store %arg9[%c0_82, %c1_83, %c0_84, %c0_85], %88 {strides = array<i32>} : memref<1x8x8x128xbf16, #tpu.memory_space<vmem>>, vector<1x1x8x128xbf16>,
    %c0_86 = arith.constant 0 : index
    %c2_87 = arith.constant 2 : index
    %c0_88 = arith.constant 0 : index
    %c0_89 = arith.constant 0 : index
    %c0_90 = arith.constant 0 : index
    %89 = vector.load %arg3[%c0_86, %c2_87, %c0_88, %c0_89, %c0_90] : memref<1x8x1x9x8xbf16, #tpu.memory_space<vmem>>, vector<1x1x1x9x8xbf16>
    %90 = vector.shape_cast %89 : vector<1x1x1x9x8xbf16> to vector<9x8xbf16>
    %c0_91 = arith.constant 0 : index
    %c2_92 = arith.constant 2 : index
    %c0_93 = arith.constant 0 : index
    %c0_94 = arith.constant 0 : index
    %c0_95 = arith.constant 0 : index
    %91 = vector.load %arg4[%c0_91, %c2_92, %c0_93, %c0_94, %c0_95] : memref<1x8x1x9x8xbf16, #tpu.memory_space<vmem>>, vector<1x1x1x9x8xbf16>
    %92 = vector.shape_cast %91 : vector<1x1x1x9x8xbf16> to vector<9x8xbf16>
    %c0_96 = arith.constant 0 : index
    %c3 = arith.constant 3 : index
    %c0_97 = arith.constant 0 : index
    %c0_98 = arith.constant 0 : index
    %c0_99 = arith.constant 0 : index
    %93 = vector.load %arg3[%c0_96, %c3, %c0_97, %c0_98, %c0_99] : memref<1x8x1x9x8xbf16, #tpu.memory_space<vmem>>, vector<1x1x1x9x8xbf16>
    %94 = vector.shape_cast %93 : vector<1x1x1x9x8xbf16> to vector<9x8xbf16>
    %95 = vector.extract_strided_slice %90 {offsets = [0, 0], sizes = [8, 8], strides = [1, 1]} : vector<9x8xbf16> to vector<8x8xbf16>
    %c0_100 = arith.constant 0 : index
    %c0_101 = arith.constant 0 : index
    %c0_102 = arith.constant 0 : index
    %96 = vector.load %arg6[%c0_100, %c0_101, %c0_102] : memref<3x8x128xbf16, #tpu.memory_space<vmem>>, vector<1x8x128xbf16>
    %97 = vector.shape_cast %96 : vector<1x8x128xbf16> to vector<8x128xbf16>
    %cst_103 = arith.constant dense<0.000000e+00> : vector<8x128xf32>
    %98 = tpu.matmul %95, %97, %cst_103 {dimension_numbers = #tpu.dot_dimension_numbers<[1], [0], [0], [1], [0, 0, 1, 1], [], []>} : vector<8x8xbf16>, vector<8x128xbf16>, vector<8x128xf32> -> vector<8x128xf32>
    %99 = vector.extract_strided_slice %92 {offsets = [0, 0], sizes = [8, 8], strides = [1, 1]} : vector<9x8xbf16> to vector<8x8xbf16>
    %c1_104 = arith.constant 1 : index
    %c0_105 = arith.constant 0 : index
    %c0_106 = arith.constant 0 : index
    %100 = vector.load %arg6[%c1_104, %c0_105, %c0_106] : memref<3x8x128xbf16, #tpu.memory_space<vmem>>, vector<1x8x128xbf16>
    %101 = vector.shape_cast %100 : vector<1x8x128xbf16> to vector<8x128xbf16>
    %cst_107 = arith.constant dense<0.000000e+00> : vector<8x128xf32>
    %102 = tpu.matmul %99, %101, %cst_107 {dimension_numbers = #tpu.dot_dimension_numbers<[1], [0], [0], [1], [0, 0, 1, 1], [], []>} : vector<8x8xbf16>, vector<8x128xbf16>, vector<8x128xf32> -> vector<8x128xf32>
    %103 = arith.addf %98, %102 : vector<8x128xf32>
    %104 = vector.extract_strided_slice %94 {offsets = [0, 0], sizes = [8, 8], strides = [1, 1]} : vector<9x8xbf16> to vector<8x8xbf16>
    %c2_108 = arith.constant 2 : index
    %c0_109 = arith.constant 0 : index
    %c0_110 = arith.constant 0 : index
    %105 = vector.load %arg6[%c2_108, %c0_109, %c0_110] : memref<3x8x128xbf16, #tpu.memory_space<vmem>>, vector<1x8x128xbf16>
    %106 = vector.shape_cast %105 : vector<1x8x128xbf16> to vector<8x128xbf16>
    %cst_111 = arith.constant dense<0.000000e+00> : vector<8x128xf32>
    %107 = tpu.matmul %104, %106, %cst_111 {dimension_numbers = #tpu.dot_dimension_numbers<[1], [0], [0], [1], [0, 0, 1, 1], [], []>} : vector<8x8xbf16>, vector<8x128xbf16>, vector<8x128xf32> -> vector<8x128xf32>
    %108 = arith.addf %103, %107 : vector<8x128xf32>
    %109 = vector.extract_strided_slice %90 {offsets = [1, 0], sizes = [8, 4], strides = [1, 1]} : vector<9x8xbf16> to vector<8x4xbf16>
    %c0_112 = arith.constant 0 : index
    %c0_113 = arith.constant 0 : index
    %c0_114 = arith.constant 0 : index
    %110 = vector.load %arg7[%c0_112, %c0_113, %c0_114] : memref<3x4x128xbf16, #tpu.memory_space<vmem>>, vector<1x4x128xbf16>
    %111 = vector.shape_cast %110 : vector<1x4x128xbf16> to vector<4x128xbf16>
    %cst_115 = arith.constant dense<0.000000e+00> : vector<8x128xf32>
    %112 = tpu.matmul %109, %111, %cst_115 {dimension_numbers = #tpu.dot_dimension_numbers<[1], [0], [0], [1], [0, 0, 1, 1], [], []>} : vector<8x4xbf16>, vector<4x128xbf16>, vector<8x128xf32> -> vector<8x128xf32>
    %113 = arith.addf %108, %112 : vector<8x128xf32>
    %114 = vector.extract_strided_slice %92 {offsets = [1, 0], sizes = [8, 4], strides = [1, 1]} : vector<9x8xbf16> to vector<8x4xbf16>
    %c1_116 = arith.constant 1 : index
    %c0_117 = arith.constant 0 : index
    %c0_118 = arith.constant 0 : index
    %115 = vector.load %arg7[%c1_116, %c0_117, %c0_118] : memref<3x4x128xbf16, #tpu.memory_space<vmem>>, vector<1x4x128xbf16>
    %116 = vector.shape_cast %115 : vector<1x4x128xbf16> to vector<4x128xbf16>
    %cst_119 = arith.constant dense<0.000000e+00> : vector<8x128xf32>
    %117 = tpu.matmul %114, %116, %cst_119 {dimension_numbers = #tpu.dot_dimension_numbers<[1], [0], [0], [1], [0, 0, 1, 1], [], []>} : vector<8x4xbf16>, vector<4x128xbf16>, vector<8x128xf32> -> vector<8x128xf32>
    %118 = arith.addf %113, %117 : vector<8x128xf32>
    %119 = vector.extract_strided_slice %94 {offsets = [1, 0], sizes = [8, 4], strides = [1, 1]} : vector<9x8xbf16> to vector<8x4xbf16>
    %c2_120 = arith.constant 2 : index
    %c0_121 = arith.constant 0 : index
    %c0_122 = arith.constant 0 : index
    %120 = vector.load %arg7[%c2_120, %c0_121, %c0_122] : memref<3x4x128xbf16, #tpu.memory_space<vmem>>, vector<1x4x128xbf16>
    %121 = vector.shape_cast %120 : vector<1x4x128xbf16> to vector<4x128xbf16>
    %cst_123 = arith.constant dense<0.000000e+00> : vector<8x128xf32>
    %122 = tpu.matmul %119, %121, %cst_123 {dimension_numbers = #tpu.dot_dimension_numbers<[1], [0], [0], [1], [0, 0, 1, 1], [], []>} : vector<8x4xbf16>, vector<4x128xbf16>, vector<8x128xf32> -> vector<8x128xf32>
    %123 = arith.addf %118, %122 : vector<8x128xf32>
    %124 = vector.broadcast %0 : vector<1x128xf32> to vector<8x128xf32>
    %125 = arith.addf %123, %124 : vector<8x128xf32>
    %cst_124 = arith.constant 1.000000e-01 : f32
    %126 = vector.broadcast %cst_124 : f32 to vector<8x128xf32>
    %127 = arith.mulf %126, %125 : vector<8x128xf32>
    %128 = arith.maximumf %125, %127 : vector<8x128xf32>
    %129 = arith.truncf %128 : vector<8x128xf32> to vector<8x128xbf16>
    %c0_125 = arith.constant 0 : index
    %c2_126 = arith.constant 2 : index
    %c0_127 = arith.constant 0 : index
    %c0_128 = arith.constant 0 : index
    %130 = vector.load %arg9[%c0_125, %c2_126, %c0_127, %c0_128] : memref<1x8x8x128xbf16, #tpu.memory_space<vmem>>, vector<1x1x8x128xbf16>
    %131 = vector.shape_cast %130 : vector<1x1x8x128xbf16> to vector<8x128xbf16>
    %132 = vector.shape_cast %129 : vector<8x128xbf16> to vector<1x1x8x128xbf16>
    tpu.vector_store %arg9[%c0_125, %c2_126, %c0_127, %c0_128], %132 {strides = array<i32>} : memref<1x8x8x128xbf16, #tpu.memory_space<vmem>>, vector<1x1x8x128xbf16>,
    %c0_129 = arith.constant 0 : index
    %c3_130 = arith.constant 3 : index
    %c0_131 = arith.constant 0 : index
    %c0_132 = arith.constant 0 : index
    %c0_133 = arith.constant 0 : index
    %133 = vector.load %arg3[%c0_129, %c3_130, %c0_131, %c0_132, %c0_133] : memref<1x8x1x9x8xbf16, #tpu.memory_space<vmem>>, vector<1x1x1x9x8xbf16>
    %134 = vector.shape_cast %133 : vector<1x1x1x9x8xbf16> to vector<9x8xbf16>
    %c0_134 = arith.constant 0 : index
    %c3_135 = arith.constant 3 : index
    %c0_136 = arith.constant 0 : index
    %c0_137 = arith.constant 0 : index
    %c0_138 = arith.constant 0 : index
    %135 = vector.load %arg4[%c0_134, %c3_135, %c0_136, %c0_137, %c0_138] : memref<1x8x1x9x8xbf16, #tpu.memory_space<vmem>>, vector<1x1x1x9x8xbf16>
    %136 = vector.shape_cast %135 : vector<1x1x1x9x8xbf16> to vector<9x8xbf16>
    %c0_139 = arith.constant 0 : index
    %c4 = arith.constant 4 : index
    %c0_140 = arith.constant 0 : index
    %c0_141 = arith.constant 0 : index
    %c0_142 = arith.constant 0 : index
    %137 = vector.load %arg3[%c0_139, %c4, %c0_140, %c0_141, %c0_142] : memref<1x8x1x9x8xbf16, #tpu.memory_space<vmem>>, vector<1x1x1x9x8xbf16>
    %138 = vector.shape_cast %137 : vector<1x1x1x9x8xbf16> to vector<9x8xbf16>
    %139 = vector.extract_strided_slice %134 {offsets = [0, 0], sizes = [8, 8], strides = [1, 1]} : vector<9x8xbf16> to vector<8x8xbf16>
    %c0_143 = arith.constant 0 : index
    %c0_144 = arith.constant 0 : index
    %c0_145 = arith.constant 0 : index
    %140 = vector.load %arg6[%c0_143, %c0_144, %c0_145] : memref<3x8x128xbf16, #tpu.memory_space<vmem>>, vector<1x8x128xbf16>
    %141 = vector.shape_cast %140 : vector<1x8x128xbf16> to vector<8x128xbf16>
    %cst_146 = arith.constant dense<0.000000e+00> : vector<8x128xf32>
    %142 = tpu.matmul %139, %141, %cst_146 {dimension_numbers = #tpu.dot_dimension_numbers<[1], [0], [0], [1], [0, 0, 1, 1], [], []>} : vector<8x8xbf16>, vector<8x128xbf16>, vector<8x128xf32> -> vector<8x128xf32>
    %143 = vector.extract_strided_slice %136 {offsets = [0, 0], sizes = [8, 8], strides = [1, 1]} : vector<9x8xbf16> to vector<8x8xbf16>
    %c1_147 = arith.constant 1 : index
    %c0_148 = arith.constant 0 : index
    %c0_149 = arith.constant 0 : index
    %144 = vector.load %arg6[%c1_147, %c0_148, %c0_149] : memref<3x8x128xbf16, #tpu.memory_space<vmem>>, vector<1x8x128xbf16>
    %145 = vector.shape_cast %144 : vector<1x8x128xbf16> to vector<8x128xbf16>
    %cst_150 = arith.constant dense<0.000000e+00> : vector<8x128xf32>
    %146 = tpu.matmul %143, %145, %cst_150 {dimension_numbers = #tpu.dot_dimension_numbers<[1], [0], [0], [1], [0, 0, 1, 1], [], []>} : vector<8x8xbf16>, vector<8x128xbf16>, vector<8x128xf32> -> vector<8x128xf32>
    %147 = arith.addf %142, %146 : vector<8x128xf32>
    %148 = vector.extract_strided_slice %138 {offsets = [0, 0], sizes = [8, 8], strides = [1, 1]} : vector<9x8xbf16> to vector<8x8xbf16>
    %c2_151 = arith.constant 2 : index
    %c0_152 = arith.constant 0 : index
    %c0_153 = arith.constant 0 : index
    %149 = vector.load %arg6[%c2_151, %c0_152, %c0_153] : memref<3x8x128xbf16, #tpu.memory_space<vmem>>, vector<1x8x128xbf16>
    %150 = vector.shape_cast %149 : vector<1x8x128xbf16> to vector<8x128xbf16>
    %cst_154 = arith.constant dense<0.000000e+00> : vector<8x128xf32>
    %151 = tpu.matmul %148, %150, %cst_154 {dimension_numbers = #tpu.dot_dimension_numbers<[1], [0], [0], [1], [0, 0, 1, 1], [], []>} : vector<8x8xbf16>, vector<8x128xbf16>, vector<8x128xf32> -> vector<8x128xf32>
    %152 = arith.addf %147, %151 : vector<8x128xf32>
    %153 = vector.extract_strided_slice %134 {offsets = [1, 0], sizes = [8, 4], strides = [1, 1]} : vector<9x8xbf16> to vector<8x4xbf16>
    %c0_155 = arith.constant 0 : index
    %c0_156 = arith.constant 0 : index
    %c0_157 = arith.constant 0 : index
    %154 = vector.load %arg7[%c0_155, %c0_156, %c0_157] : memref<3x4x128xbf16, #tpu.memory_space<vmem>>, vector<1x4x128xbf16>
    %155 = vector.shape_cast %154 : vector<1x4x128xbf16> to vector<4x128xbf16>
    %cst_158 = arith.constant dense<0.000000e+00> : vector<8x128xf32>
    %156 = tpu.matmul %153, %155, %cst_158 {dimension_numbers = #tpu.dot_dimension_numbers<[1], [0], [0], [1], [0, 0, 1, 1], [], []>} : vector<8x4xbf16>, vector<4x128xbf16>, vector<8x128xf32> -> vector<8x128xf32>
    %157 = arith.addf %152, %156 : vector<8x128xf32>
    %158 = vector.extract_strided_slice %136 {offsets = [1, 0], sizes = [8, 4], strides = [1, 1]} : vector<9x8xbf16> to vector<8x4xbf16>
    %c1_159 = arith.constant 1 : index
    %c0_160 = arith.constant 0 : index
    %c0_161 = arith.constant 0 : index
    %159 = vector.load %arg7[%c1_159, %c0_160, %c0_161] : memref<3x4x128xbf16, #tpu.memory_space<vmem>>, vector<1x4x128xbf16>
    %160 = vector.shape_cast %159 : vector<1x4x128xbf16> to vector<4x128xbf16>
    %cst_162 = arith.constant dense<0.000000e+00> : vector<8x128xf32>
    %161 = tpu.matmul %158, %160, %cst_162 {dimension_numbers = #tpu.dot_dimension_numbers<[1], [0], [0], [1], [0, 0, 1, 1], [], []>} : vector<8x4xbf16>, vector<4x128xbf16>, vector<8x128xf32> -> vector<8x128xf32>
    %162 = arith.addf %157, %161 : vector<8x128xf32>
    %163 = vector.extract_strided_slice %138 {offsets = [1, 0], sizes = [8, 4], strides = [1, 1]} : vector<9x8xbf16> to vector<8x4xbf16>
    %c2_163 = arith.constant 2 : index
    %c0_164 = arith.constant 0 : index
    %c0_165 = arith.constant 0 : index
    %164 = vector.load %arg7[%c2_163, %c0_164, %c0_165] : memref<3x4x128xbf16, #tpu.memory_space<vmem>>, vector<1x4x128xbf16>
    %165 = vector.shape_cast %164 : vector<1x4x128xbf16> to vector<4x128xbf16>
    %cst_166 = arith.constant dense<0.000000e+00> : vector<8x128xf32>
    %166 = tpu.matmul %163, %165, %cst_166 {dimension_numbers = #tpu.dot_dimension_numbers<[1], [0], [0], [1], [0, 0, 1, 1], [], []>} : vector<8x4xbf16>, vector<4x128xbf16>, vector<8x128xf32> -> vector<8x128xf32>
    %167 = arith.addf %162, %166 : vector<8x128xf32>
    %168 = vector.broadcast %0 : vector<1x128xf32> to vector<8x128xf32>
    %169 = arith.addf %167, %168 : vector<8x128xf32>
    %cst_167 = arith.constant 1.000000e-01 : f32
    %170 = vector.broadcast %cst_167 : f32 to vector<8x128xf32>
    %171 = arith.mulf %170, %169 : vector<8x128xf32>
    %172 = arith.maximumf %169, %171 : vector<8x128xf32>
    %173 = arith.truncf %172 : vector<8x128xf32> to vector<8x128xbf16>
    %c0_168 = arith.constant 0 : index
    %c3_169 = arith.constant 3 : index
    %c0_170 = arith.constant 0 : index
    %c0_171 = arith.constant 0 : index
    %174 = vector.load %arg9[%c0_168, %c3_169, %c0_170, %c0_171] : memref<1x8x8x128xbf16, #tpu.memory_space<vmem>>, vector<1x1x8x128xbf16>
    %175 = vector.shape_cast %174 : vector<1x1x8x128xbf16> to vector<8x128xbf16>
    %176 = vector.shape_cast %173 : vector<8x128xbf16> to vector<1x1x8x128xbf16>
    tpu.vector_store %arg9[%c0_168, %c3_169, %c0_170, %c0_171], %176 {strides = array<i32>} : memref<1x8x8x128xbf16, #tpu.memory_space<vmem>>, vector<1x1x8x128xbf16>,
    %c0_172 = arith.constant 0 : index
    %c4_173 = arith.constant 4 : index
    %c0_174 = arith.constant 0 : index
    %c0_175 = arith.constant 0 : index
    %c0_176 = arith.constant 0 : index
    %177 = vector.load %arg3[%c0_172, %c4_173, %c0_174, %c0_175, %c0_176] : memref<1x8x1x9x8xbf16, #tpu.memory_space<vmem>>, vector<1x1x1x9x8xbf16>
    %178 = vector.shape_cast %177 : vector<1x1x1x9x8xbf16> to vector<9x8xbf16>
    %c0_177 = arith.constant 0 : index
    %c4_178 = arith.constant 4 : index
    %c0_179 = arith.constant 0 : index
    %c0_180 = arith.constant 0 : index
    %c0_181 = arith.constant 0 : index
    %179 = vector.load %arg4[%c0_177, %c4_178, %c0_179, %c0_180, %c0_181] : memref<1x8x1x9x8xbf16, #tpu.memory_space<vmem>>, vector<1x1x1x9x8xbf16>
    %180 = vector.shape_cast %179 : vector<1x1x1x9x8xbf16> to vector<9x8xbf16>
    %c0_182 = arith.constant 0 : index
    %c5 = arith.constant 5 : index
    %c0_183 = arith.constant 0 : index
    %c0_184 = arith.constant 0 : index
    %c0_185 = arith.constant 0 : index
    %181 = vector.load %arg3[%c0_182, %c5, %c0_183, %c0_184, %c0_185] : memref<1x8x1x9x8xbf16, #tpu.memory_space<vmem>>, vector<1x1x1x9x8xbf16>
    %182 = vector.shape_cast %181 : vector<1x1x1x9x8xbf16> to vector<9x8xbf16>
    %183 = vector.extract_strided_slice %178 {offsets = [0, 0], sizes = [8, 8], strides = [1, 1]} : vector<9x8xbf16> to vector<8x8xbf16>
    %c0_186 = arith.constant 0 : index
    %c0_187 = arith.constant 0 : index
    %c0_188 = arith.constant 0 : index
    %184 = vector.load %arg6[%c0_186, %c0_187, %c0_188] : memref<3x8x128xbf16, #tpu.memory_space<vmem>>, vector<1x8x128xbf16>
    %185 = vector.shape_cast %184 : vector<1x8x128xbf16> to vector<8x128xbf16>
    %cst_189 = arith.constant dense<0.000000e+00> : vector<8x128xf32>
    %186 = tpu.matmul %183, %185, %cst_189 {dimension_numbers = #tpu.dot_dimension_numbers<[1], [0], [0], [1], [0, 0, 1, 1], [], []>} : vector<8x8xbf16>, vector<8x128xbf16>, vector<8x128xf32> -> vector<8x128xf32>
    %187 = vector.extract_strided_slice %180 {offsets = [0, 0], sizes = [8, 8], strides = [1, 1]} : vector<9x8xbf16> to vector<8x8xbf16>
    %c1_190 = arith.constant 1 : index
    %c0_191 = arith.constant 0 : index
    %c0_192 = arith.constant 0 : index
    %188 = vector.load %arg6[%c1_190, %c0_191, %c0_192] : memref<3x8x128xbf16, #tpu.memory_space<vmem>>, vector<1x8x128xbf16>
    %189 = vector.shape_cast %188 : vector<1x8x128xbf16> to vector<8x128xbf16>
    %cst_193 = arith.constant dense<0.000000e+00> : vector<8x128xf32>
    %190 = tpu.matmul %187, %189, %cst_193 {dimension_numbers = #tpu.dot_dimension_numbers<[1], [0], [0], [1], [0, 0, 1, 1], [], []>} : vector<8x8xbf16>, vector<8x128xbf16>, vector<8x128xf32> -> vector<8x128xf32>
    %191 = arith.addf %186, %190 : vector<8x128xf32>
    %192 = vector.extract_strided_slice %182 {offsets = [0, 0], sizes = [8, 8], strides = [1, 1]} : vector<9x8xbf16> to vector<8x8xbf16>
    %c2_194 = arith.constant 2 : index
    %c0_195 = arith.constant 0 : index
    %c0_196 = arith.constant 0 : index
    %193 = vector.load %arg6[%c2_194, %c0_195, %c0_196] : memref<3x8x128xbf16, #tpu.memory_space<vmem>>, vector<1x8x128xbf16>
    %194 = vector.shape_cast %193 : vector<1x8x128xbf16> to vector<8x128xbf16>
    %cst_197 = arith.constant dense<0.000000e+00> : vector<8x128xf32>
    %195 = tpu.matmul %192, %194, %cst_197 {dimension_numbers = #tpu.dot_dimension_numbers<[1], [0], [0], [1], [0, 0, 1, 1], [], []>} : vector<8x8xbf16>, vector<8x128xbf16>, vector<8x128xf32> -> vector<8x128xf32>
    %196 = arith.addf %191, %195 : vector<8x128xf32>
    %197 = vector.extract_strided_slice %178 {offsets = [1, 0], sizes = [8, 4], strides = [1, 1]} : vector<9x8xbf16> to vector<8x4xbf16>
    %c0_198 = arith.constant 0 : index
    %c0_199 = arith.constant 0 : index
    %c0_200 = arith.constant 0 : index
    %198 = vector.load %arg7[%c0_198, %c0_199, %c0_200] : memref<3x4x128xbf16, #tpu.memory_space<vmem>>, vector<1x4x128xbf16>
    %199 = vector.shape_cast %198 : vector<1x4x128xbf16> to vector<4x128xbf16>
    %cst_201 = arith.constant dense<0.000000e+00> : vector<8x128xf32>
    %200 = tpu.matmul %197, %199, %cst_201 {dimension_numbers = #tpu.dot_dimension_numbers<[1], [0], [0], [1], [0, 0, 1, 1], [], []>} : vector<8x4xbf16>, vector<4x128xbf16>, vector<8x128xf32> -> vector<8x128xf32>
    %201 = arith.addf %196, %200 : vector<8x128xf32>
    %202 = vector.extract_strided_slice %180 {offsets = [1, 0], sizes = [8, 4], strides = [1, 1]} : vector<9x8xbf16> to vector<8x4xbf16>
    %c1_202 = arith.constant 1 : index
    %c0_203 = arith.constant 0 : index
    %c0_204 = arith.constant 0 : index
    %203 = vector.load %arg7[%c1_202, %c0_203, %c0_204] : memref<3x4x128xbf16, #tpu.memory_space<vmem>>, vector<1x4x128xbf16>
    %204 = vector.shape_cast %203 : vector<1x4x128xbf16> to vector<4x128xbf16>
    %cst_205 = arith.constant dense<0.000000e+00> : vector<8x128xf32>
    %205 = tpu.matmul %202, %204, %cst_205 {dimension_numbers = #tpu.dot_dimension_numbers<[1], [0], [0], [1], [0, 0, 1, 1], [], []>} : vector<8x4xbf16>, vector<4x128xbf16>, vector<8x128xf32> -> vector<8x128xf32>
    %206 = arith.addf %201, %205 : vector<8x128xf32>
    %207 = vector.extract_strided_slice %182 {offsets = [1, 0], sizes = [8, 4], strides = [1, 1]} : vector<9x8xbf16> to vector<8x4xbf16>
    %c2_206 = arith.constant 2 : index
    %c0_207 = arith.constant 0 : index
    %c0_208 = arith.constant 0 : index
    %208 = vector.load %arg7[%c2_206, %c0_207, %c0_208] : memref<3x4x128xbf16, #tpu.memory_space<vmem>>, vector<1x4x128xbf16>
    %209 = vector.shape_cast %208 : vector<1x4x128xbf16> to vector<4x128xbf16>
    %cst_209 = arith.constant dense<0.000000e+00> : vector<8x128xf32>
    %210 = tpu.matmul %207, %209, %cst_209 {dimension_numbers = #tpu.dot_dimension_numbers<[1], [0], [0], [1], [0, 0, 1, 1], [], []>} : vector<8x4xbf16>, vector<4x128xbf16>, vector<8x128xf32> -> vector<8x128xf32>
    %211 = arith.addf %206, %210 : vector<8x128xf32>
    %212 = vector.broadcast %0 : vector<1x128xf32> to vector<8x128xf32>
    %213 = arith.addf %211, %212 : vector<8x128xf32>
    %cst_210 = arith.constant 1.000000e-01 : f32
    %214 = vector.broadcast %cst_210 : f32 to vector<8x128xf32>
    %215 = arith.mulf %214, %213 : vector<8x128xf32>
    %216 = arith.maximumf %213, %215 : vector<8x128xf32>
    %217 = arith.truncf %216 : vector<8x128xf32> to vector<8x128xbf16>
    %c0_211 = arith.constant 0 : index
    %c4_212 = arith.constant 4 : index
    %c0_213 = arith.constant 0 : index
    %c0_214 = arith.constant 0 : index
    %218 = vector.load %arg9[%c0_211, %c4_212, %c0_213, %c0_214] : memref<1x8x8x128xbf16, #tpu.memory_space<vmem>>, vector<1x1x8x128xbf16>
    %219 = vector.shape_cast %218 : vector<1x1x8x128xbf16> to vector<8x128xbf16>
    %220 = vector.shape_cast %217 : vector<8x128xbf16> to vector<1x1x8x128xbf16>
    tpu.vector_store %arg9[%c0_211, %c4_212, %c0_213, %c0_214], %220 {strides = array<i32>} : memref<1x8x8x128xbf16, #tpu.memory_space<vmem>>, vector<1x1x8x128xbf16>,
    %c0_215 = arith.constant 0 : index
    %c5_216 = arith.constant 5 : index
    %c0_217 = arith.constant 0 : index
    %c0_218 = arith.constant 0 : index
    %c0_219 = arith.constant 0 : index
    %221 = vector.load %arg3[%c0_215, %c5_216, %c0_217, %c0_218, %c0_219] : memref<1x8x1x9x8xbf16, #tpu.memory_space<vmem>>, vector<1x1x1x9x8xbf16>
    %222 = vector.shape_cast %221 : vector<1x1x1x9x8xbf16> to vector<9x8xbf16>
    %c0_220 = arith.constant 0 : index
    %c5_221 = arith.constant 5 : index
    %c0_222 = arith.constant 0 : index
    %c0_223 = arith.constant 0 : index
    %c0_224 = arith.constant 0 : index
    %223 = vector.load %arg4[%c0_220, %c5_221, %c0_222, %c0_223, %c0_224] : memref<1x8x1x9x8xbf16, #tpu.memory_space<vmem>>, vector<1x1x1x9x8xbf16>
    %224 = vector.shape_cast %223 : vector<1x1x1x9x8xbf16> to vector<9x8xbf16>
    %c0_225 = arith.constant 0 : index
    %c6 = arith.constant 6 : index
    %c0_226 = arith.constant 0 : index
    %c0_227 = arith.constant 0 : index
    %c0_228 = arith.constant 0 : index
    %225 = vector.load %arg3[%c0_225, %c6, %c0_226, %c0_227, %c0_228] : memref<1x8x1x9x8xbf16, #tpu.memory_space<vmem>>, vector<1x1x1x9x8xbf16>
    %226 = vector.shape_cast %225 : vector<1x1x1x9x8xbf16> to vector<9x8xbf16>
    %227 = vector.extract_strided_slice %222 {offsets = [0, 0], sizes = [8, 8], strides = [1, 1]} : vector<9x8xbf16> to vector<8x8xbf16>
    %c0_229 = arith.constant 0 : index
    %c0_230 = arith.constant 0 : index
    %c0_231 = arith.constant 0 : index
    %228 = vector.load %arg6[%c0_229, %c0_230, %c0_231] : memref<3x8x128xbf16, #tpu.memory_space<vmem>>, vector<1x8x128xbf16>
    %229 = vector.shape_cast %228 : vector<1x8x128xbf16> to vector<8x128xbf16>
    %cst_232 = arith.constant dense<0.000000e+00> : vector<8x128xf32>
    %230 = tpu.matmul %227, %229, %cst_232 {dimension_numbers = #tpu.dot_dimension_numbers<[1], [0], [0], [1], [0, 0, 1, 1], [], []>} : vector<8x8xbf16>, vector<8x128xbf16>, vector<8x128xf32> -> vector<8x128xf32>
    %231 = vector.extract_strided_slice %224 {offsets = [0, 0], sizes = [8, 8], strides = [1, 1]} : vector<9x8xbf16> to vector<8x8xbf16>
    %c1_233 = arith.constant 1 : index
    %c0_234 = arith.constant 0 : index
    %c0_235 = arith.constant 0 : index
    %232 = vector.load %arg6[%c1_233, %c0_234, %c0_235] : memref<3x8x128xbf16, #tpu.memory_space<vmem>>, vector<1x8x128xbf16>
    %233 = vector.shape_cast %232 : vector<1x8x128xbf16> to vector<8x128xbf16>
    %cst_236 = arith.constant dense<0.000000e+00> : vector<8x128xf32>
    %234 = tpu.matmul %231, %233, %cst_236 {dimension_numbers = #tpu.dot_dimension_numbers<[1], [0], [0], [1], [0, 0, 1, 1], [], []>} : vector<8x8xbf16>, vector<8x128xbf16>, vector<8x128xf32> -> vector<8x128xf32>
    %235 = arith.addf %230, %234 : vector<8x128xf32>
    %236 = vector.extract_strided_slice %226 {offsets = [0, 0], sizes = [8, 8], strides = [1, 1]} : vector<9x8xbf16> to vector<8x8xbf16>
    %c2_237 = arith.constant 2 : index
    %c0_238 = arith.constant 0 : index
    %c0_239 = arith.constant 0 : index
    %237 = vector.load %arg6[%c2_237, %c0_238, %c0_239] : memref<3x8x128xbf16, #tpu.memory_space<vmem>>, vector<1x8x128xbf16>
    %238 = vector.shape_cast %237 : vector<1x8x128xbf16> to vector<8x128xbf16>
    %cst_240 = arith.constant dense<0.000000e+00> : vector<8x128xf32>
    %239 = tpu.matmul %236, %238, %cst_240 {dimension_numbers = #tpu.dot_dimension_numbers<[1], [0], [0], [1], [0, 0, 1, 1], [], []>} : vector<8x8xbf16>, vector<8x128xbf16>, vector<8x128xf32> -> vector<8x128xf32>
    %240 = arith.addf %235, %239 : vector<8x128xf32>
    %241 = vector.extract_strided_slice %222 {offsets = [1, 0], sizes = [8, 4], strides = [1, 1]} : vector<9x8xbf16> to vector<8x4xbf16>
    %c0_241 = arith.constant 0 : index
    %c0_242 = arith.constant 0 : index
    %c0_243 = arith.constant 0 : index
    %242 = vector.load %arg7[%c0_241, %c0_242, %c0_243] : memref<3x4x128xbf16, #tpu.memory_space<vmem>>, vector<1x4x128xbf16>
    %243 = vector.shape_cast %242 : vector<1x4x128xbf16> to vector<4x128xbf16>
    %cst_244 = arith.constant dense<0.000000e+00> : vector<8x128xf32>
    %244 = tpu.matmul %241, %243, %cst_244 {dimension_numbers = #tpu.dot_dimension_numbers<[1], [0], [0], [1], [0, 0, 1, 1], [], []>} : vector<8x4xbf16>, vector<4x128xbf16>, vector<8x128xf32> -> vector<8x128xf32>
    %245 = arith.addf %240, %244 : vector<8x128xf32>
    %246 = vector.extract_strided_slice %224 {offsets = [1, 0], sizes = [8, 4], strides = [1, 1]} : vector<9x8xbf16> to vector<8x4xbf16>
    %c1_245 = arith.constant 1 : index
    %c0_246 = arith.constant 0 : index
    %c0_247 = arith.constant 0 : index
    %247 = vector.load %arg7[%c1_245, %c0_246, %c0_247] : memref<3x4x128xbf16, #tpu.memory_space<vmem>>, vector<1x4x128xbf16>
    %248 = vector.shape_cast %247 : vector<1x4x128xbf16> to vector<4x128xbf16>
    %cst_248 = arith.constant dense<0.000000e+00> : vector<8x128xf32>
    %249 = tpu.matmul %246, %248, %cst_248 {dimension_numbers = #tpu.dot_dimension_numbers<[1], [0], [0], [1], [0, 0, 1, 1], [], []>} : vector<8x4xbf16>, vector<4x128xbf16>, vector<8x128xf32> -> vector<8x128xf32>
    %250 = arith.addf %245, %249 : vector<8x128xf32>
    %251 = vector.extract_strided_slice %226 {offsets = [1, 0], sizes = [8, 4], strides = [1, 1]} : vector<9x8xbf16> to vector<8x4xbf16>
    %c2_249 = arith.constant 2 : index
    %c0_250 = arith.constant 0 : index
    %c0_251 = arith.constant 0 : index
    %252 = vector.load %arg7[%c2_249, %c0_250, %c0_251] : memref<3x4x128xbf16, #tpu.memory_space<vmem>>, vector<1x4x128xbf16>
    %253 = vector.shape_cast %252 : vector<1x4x128xbf16> to vector<4x128xbf16>
    %cst_252 = arith.constant dense<0.000000e+00> : vector<8x128xf32>
    %254 = tpu.matmul %251, %253, %cst_252 {dimension_numbers = #tpu.dot_dimension_numbers<[1], [0], [0], [1], [0, 0, 1, 1], [], []>} : vector<8x4xbf16>, vector<4x128xbf16>, vector<8x128xf32> -> vector<8x128xf32>
    %255 = arith.addf %250, %254 : vector<8x128xf32>
    %256 = vector.broadcast %0 : vector<1x128xf32> to vector<8x128xf32>
    %257 = arith.addf %255, %256 : vector<8x128xf32>
    %cst_253 = arith.constant 1.000000e-01 : f32
    %258 = vector.broadcast %cst_253 : f32 to vector<8x128xf32>
    %259 = arith.mulf %258, %257 : vector<8x128xf32>
    %260 = arith.maximumf %257, %259 : vector<8x128xf32>
    %261 = arith.truncf %260 : vector<8x128xf32> to vector<8x128xbf16>
    %c0_254 = arith.constant 0 : index
    %c5_255 = arith.constant 5 : index
    %c0_256 = arith.constant 0 : index
    %c0_257 = arith.constant 0 : index
    %262 = vector.load %arg9[%c0_254, %c5_255, %c0_256, %c0_257] : memref<1x8x8x128xbf16, #tpu.memory_space<vmem>>, vector<1x1x8x128xbf16>
    %263 = vector.shape_cast %262 : vector<1x1x8x128xbf16> to vector<8x128xbf16>
    %264 = vector.shape_cast %261 : vector<8x128xbf16> to vector<1x1x8x128xbf16>
    tpu.vector_store %arg9[%c0_254, %c5_255, %c0_256, %c0_257], %264 {strides = array<i32>} : memref<1x8x8x128xbf16, #tpu.memory_space<vmem>>, vector<1x1x8x128xbf16>,
    %c0_258 = arith.constant 0 : index
    %c6_259 = arith.constant 6 : index
    %c0_260 = arith.constant 0 : index
    %c0_261 = arith.constant 0 : index
    %c0_262 = arith.constant 0 : index
    %265 = vector.load %arg3[%c0_258, %c6_259, %c0_260, %c0_261, %c0_262] : memref<1x8x1x9x8xbf16, #tpu.memory_space<vmem>>, vector<1x1x1x9x8xbf16>
    %266 = vector.shape_cast %265 : vector<1x1x1x9x8xbf16> to vector<9x8xbf16>
    %c0_263 = arith.constant 0 : index
    %c6_264 = arith.constant 6 : index
    %c0_265 = arith.constant 0 : index
    %c0_266 = arith.constant 0 : index
    %c0_267 = arith.constant 0 : index
    %267 = vector.load %arg4[%c0_263, %c6_264, %c0_265, %c0_266, %c0_267] : memref<1x8x1x9x8xbf16, #tpu.memory_space<vmem>>, vector<1x1x1x9x8xbf16>
    %268 = vector.shape_cast %267 : vector<1x1x1x9x8xbf16> to vector<9x8xbf16>
    %c0_268 = arith.constant 0 : index
    %c7 = arith.constant 7 : index
    %c0_269 = arith.constant 0 : index
    %c0_270 = arith.constant 0 : index
    %c0_271 = arith.constant 0 : index
    %269 = vector.load %arg3[%c0_268, %c7, %c0_269, %c0_270, %c0_271] : memref<1x8x1x9x8xbf16, #tpu.memory_space<vmem>>, vector<1x1x1x9x8xbf16>
    %270 = vector.shape_cast %269 : vector<1x1x1x9x8xbf16> to vector<9x8xbf16>
    %271 = vector.extract_strided_slice %266 {offsets = [0, 0], sizes = [8, 8], strides = [1, 1]} : vector<9x8xbf16> to vector<8x8xbf16>
    %c0_272 = arith.constant 0 : index
    %c0_273 = arith.constant 0 : index
    %c0_274 = arith.constant 0 : index
    %272 = vector.load %arg6[%c0_272, %c0_273, %c0_274] : memref<3x8x128xbf16, #tpu.memory_space<vmem>>, vector<1x8x128xbf16>
    %273 = vector.shape_cast %272 : vector<1x8x128xbf16> to vector<8x128xbf16>
    %cst_275 = arith.constant dense<0.000000e+00> : vector<8x128xf32>
    %274 = tpu.matmul %271, %273, %cst_275 {dimension_numbers = #tpu.dot_dimension_numbers<[1], [0], [0], [1], [0, 0, 1, 1], [], []>} : vector<8x8xbf16>, vector<8x128xbf16>, vector<8x128xf32> -> vector<8x128xf32>
    %275 = vector.extract_strided_slice %268 {offsets = [0, 0], sizes = [8, 8], strides = [1, 1]} : vector<9x8xbf16> to vector<8x8xbf16>
    %c1_276 = arith.constant 1 : index
    %c0_277 = arith.constant 0 : index
    %c0_278 = arith.constant 0 : index
    %276 = vector.load %arg6[%c1_276, %c0_277, %c0_278] : memref<3x8x128xbf16, #tpu.memory_space<vmem>>, vector<1x8x128xbf16>
    %277 = vector.shape_cast %276 : vector<1x8x128xbf16> to vector<8x128xbf16>
    %cst_279 = arith.constant dense<0.000000e+00> : vector<8x128xf32>
    %278 = tpu.matmul %275, %277, %cst_279 {dimension_numbers = #tpu.dot_dimension_numbers<[1], [0], [0], [1], [0, 0, 1, 1], [], []>} : vector<8x8xbf16>, vector<8x128xbf16>, vector<8x128xf32> -> vector<8x128xf32>
    %279 = arith.addf %274, %278 : vector<8x128xf32>
    %280 = vector.extract_strided_slice %270 {offsets = [0, 0], sizes = [8, 8], strides = [1, 1]} : vector<9x8xbf16> to vector<8x8xbf16>
    %c2_280 = arith.constant 2 : index
    %c0_281 = arith.constant 0 : index
    %c0_282 = arith.constant 0 : index
    %281 = vector.load %arg6[%c2_280, %c0_281, %c0_282] : memref<3x8x128xbf16, #tpu.memory_space<vmem>>, vector<1x8x128xbf16>
    %282 = vector.shape_cast %281 : vector<1x8x128xbf16> to vector<8x128xbf16>
    %cst_283 = arith.constant dense<0.000000e+00> : vector<8x128xf32>
    %283 = tpu.matmul %280, %282, %cst_283 {dimension_numbers = #tpu.dot_dimension_numbers<[1], [0], [0], [1], [0, 0, 1, 1], [], []>} : vector<8x8xbf16>, vector<8x128xbf16>, vector<8x128xf32> -> vector<8x128xf32>
    %284 = arith.addf %279, %283 : vector<8x128xf32>
    %285 = vector.extract_strided_slice %266 {offsets = [1, 0], sizes = [8, 4], strides = [1, 1]} : vector<9x8xbf16> to vector<8x4xbf16>
    %c0_284 = arith.constant 0 : index
    %c0_285 = arith.constant 0 : index
    %c0_286 = arith.constant 0 : index
    %286 = vector.load %arg7[%c0_284, %c0_285, %c0_286] : memref<3x4x128xbf16, #tpu.memory_space<vmem>>, vector<1x4x128xbf16>
    %287 = vector.shape_cast %286 : vector<1x4x128xbf16> to vector<4x128xbf16>
    %cst_287 = arith.constant dense<0.000000e+00> : vector<8x128xf32>
    %288 = tpu.matmul %285, %287, %cst_287 {dimension_numbers = #tpu.dot_dimension_numbers<[1], [0], [0], [1], [0, 0, 1, 1], [], []>} : vector<8x4xbf16>, vector<4x128xbf16>, vector<8x128xf32> -> vector<8x128xf32>
    %289 = arith.addf %284, %288 : vector<8x128xf32>
    %290 = vector.extract_strided_slice %268 {offsets = [1, 0], sizes = [8, 4], strides = [1, 1]} : vector<9x8xbf16> to vector<8x4xbf16>
    %c1_288 = arith.constant 1 : index
    %c0_289 = arith.constant 0 : index
    %c0_290 = arith.constant 0 : index
    %291 = vector.load %arg7[%c1_288, %c0_289, %c0_290] : memref<3x4x128xbf16, #tpu.memory_space<vmem>>, vector<1x4x128xbf16>
    %292 = vector.shape_cast %291 : vector<1x4x128xbf16> to vector<4x128xbf16>
    %cst_291 = arith.constant dense<0.000000e+00> : vector<8x128xf32>
    %293 = tpu.matmul %290, %292, %cst_291 {dimension_numbers = #tpu.dot_dimension_numbers<[1], [0], [0], [1], [0, 0, 1, 1], [], []>} : vector<8x4xbf16>, vector<4x128xbf16>, vector<8x128xf32> -> vector<8x128xf32>
    %294 = arith.addf %289, %293 : vector<8x128xf32>
    %295 = vector.extract_strided_slice %270 {offsets = [1, 0], sizes = [8, 4], strides = [1, 1]} : vector<9x8xbf16> to vector<8x4xbf16>
    %c2_292 = arith.constant 2 : index
    %c0_293 = arith.constant 0 : index
    %c0_294 = arith.constant 0 : index
    %296 = vector.load %arg7[%c2_292, %c0_293, %c0_294] : memref<3x4x128xbf16, #tpu.memory_space<vmem>>, vector<1x4x128xbf16>
    %297 = vector.shape_cast %296 : vector<1x4x128xbf16> to vector<4x128xbf16>
    %cst_295 = arith.constant dense<0.000000e+00> : vector<8x128xf32>
    %298 = tpu.matmul %295, %297, %cst_295 {dimension_numbers = #tpu.dot_dimension_numbers<[1], [0], [0], [1], [0, 0, 1, 1], [], []>} : vector<8x4xbf16>, vector<4x128xbf16>, vector<8x128xf32> -> vector<8x128xf32>
    %299 = arith.addf %294, %298 : vector<8x128xf32>
    %300 = vector.broadcast %0 : vector<1x128xf32> to vector<8x128xf32>
    %301 = arith.addf %299, %300 : vector<8x128xf32>
    %cst_296 = arith.constant 1.000000e-01 : f32
    %302 = vector.broadcast %cst_296 : f32 to vector<8x128xf32>
    %303 = arith.mulf %302, %301 : vector<8x128xf32>
    %304 = arith.maximumf %301, %303 : vector<8x128xf32>
    %305 = arith.truncf %304 : vector<8x128xf32> to vector<8x128xbf16>
    %c0_297 = arith.constant 0 : index
    %c6_298 = arith.constant 6 : index
    %c0_299 = arith.constant 0 : index
    %c0_300 = arith.constant 0 : index
    %306 = vector.load %arg9[%c0_297, %c6_298, %c0_299, %c0_300] : memref<1x8x8x128xbf16, #tpu.memory_space<vmem>>, vector<1x1x8x128xbf16>
    %307 = vector.shape_cast %306 : vector<1x1x8x128xbf16> to vector<8x128xbf16>
    %308 = vector.shape_cast %305 : vector<8x128xbf16> to vector<1x1x8x128xbf16>
    tpu.vector_store %arg9[%c0_297, %c6_298, %c0_299, %c0_300], %308 {strides = array<i32>} : memref<1x8x8x128xbf16, #tpu.memory_space<vmem>>, vector<1x1x8x128xbf16>,
    %c0_301 = arith.constant 0 : index
    %c7_302 = arith.constant 7 : index
    %c0_303 = arith.constant 0 : index
    %c0_304 = arith.constant 0 : index
    %c0_305 = arith.constant 0 : index
    %309 = vector.load %arg3[%c0_301, %c7_302, %c0_303, %c0_304, %c0_305] : memref<1x8x1x9x8xbf16, #tpu.memory_space<vmem>>, vector<1x1x1x9x8xbf16>
    %310 = vector.shape_cast %309 : vector<1x1x1x9x8xbf16> to vector<9x8xbf16>
    %c0_306 = arith.constant 0 : index
    %c7_307 = arith.constant 7 : index
    %c0_308 = arith.constant 0 : index
    %c0_309 = arith.constant 0 : index
    %c0_310 = arith.constant 0 : index
    %311 = vector.load %arg4[%c0_306, %c7_307, %c0_308, %c0_309, %c0_310] : memref<1x8x1x9x8xbf16, #tpu.memory_space<vmem>>, vector<1x1x1x9x8xbf16>
    %312 = vector.shape_cast %311 : vector<1x1x1x9x8xbf16> to vector<9x8xbf16>
    %c0_311 = arith.constant 0 : index
    %c0_312 = arith.constant 0 : index
    %c0_313 = arith.constant 0 : index
    %c0_314 = arith.constant 0 : index
    %c0_315 = arith.constant 0 : index
    %313 = vector.load %arg5[%c0_311, %c0_312, %c0_313, %c0_314, %c0_315] : memref<1x1x1x9x8xbf16, #tpu.memory_space<vmem>>, vector<1x1x1x9x8xbf16>
    %314 = vector.shape_cast %313 : vector<1x1x1x9x8xbf16> to vector<9x8xbf16>
    %315 = vector.extract_strided_slice %310 {offsets = [0, 0], sizes = [8, 8], strides = [1, 1]} : vector<9x8xbf16> to vector<8x8xbf16>
    %c0_316 = arith.constant 0 : index
    %c0_317 = arith.constant 0 : index
    %c0_318 = arith.constant 0 : index
    %316 = vector.load %arg6[%c0_316, %c0_317, %c0_318] : memref<3x8x128xbf16, #tpu.memory_space<vmem>>, vector<1x8x128xbf16>
    %317 = vector.shape_cast %316 : vector<1x8x128xbf16> to vector<8x128xbf16>
    %cst_319 = arith.constant dense<0.000000e+00> : vector<8x128xf32>
    %318 = tpu.matmul %315, %317, %cst_319 {dimension_numbers = #tpu.dot_dimension_numbers<[1], [0], [0], [1], [0, 0, 1, 1], [], []>} : vector<8x8xbf16>, vector<8x128xbf16>, vector<8x128xf32> -> vector<8x128xf32>
    %319 = vector.extract_strided_slice %312 {offsets = [0, 0], sizes = [8, 8], strides = [1, 1]} : vector<9x8xbf16> to vector<8x8xbf16>
    %c1_320 = arith.constant 1 : index
    %c0_321 = arith.constant 0 : index
    %c0_322 = arith.constant 0 : index
    %320 = vector.load %arg6[%c1_320, %c0_321, %c0_322] : memref<3x8x128xbf16, #tpu.memory_space<vmem>>, vector<1x8x128xbf16>
    %321 = vector.shape_cast %320 : vector<1x8x128xbf16> to vector<8x128xbf16>
    %cst_323 = arith.constant dense<0.000000e+00> : vector<8x128xf32>
    %322 = tpu.matmul %319, %321, %cst_323 {dimension_numbers = #tpu.dot_dimension_numbers<[1], [0], [0], [1], [0, 0, 1, 1], [], []>} : vector<8x8xbf16>, vector<8x128xbf16>, vector<8x128xf32> -> vector<8x128xf32>
    %323 = arith.addf %318, %322 : vector<8x128xf32>
    %324 = vector.extract_strided_slice %314 {offsets = [0, 0], sizes = [8, 8], strides = [1, 1]} : vector<9x8xbf16> to vector<8x8xbf16>
    %c2_324 = arith.constant 2 : index
    %c0_325 = arith.constant 0 : index
    %c0_326 = arith.constant 0 : index
    %325 = vector.load %arg6[%c2_324, %c0_325, %c0_326] : memref<3x8x128xbf16, #tpu.memory_space<vmem>>, vector<1x8x128xbf16>
    %326 = vector.shape_cast %325 : vector<1x8x128xbf16> to vector<8x128xbf16>
    %cst_327 = arith.constant dense<0.000000e+00> : vector<8x128xf32>
    %327 = tpu.matmul %324, %326, %cst_327 {dimension_numbers = #tpu.dot_dimension_numbers<[1], [0], [0], [1], [0, 0, 1, 1], [], []>} : vector<8x8xbf16>, vector<8x128xbf16>, vector<8x128xf32> -> vector<8x128xf32>
    %328 = arith.addf %323, %327 : vector<8x128xf32>
    %329 = vector.extract_strided_slice %310 {offsets = [1, 0], sizes = [8, 4], strides = [1, 1]} : vector<9x8xbf16> to vector<8x4xbf16>
    %c0_328 = arith.constant 0 : index
    %c0_329 = arith.constant 0 : index
    %c0_330 = arith.constant 0 : index
    %330 = vector.load %arg7[%c0_328, %c0_329, %c0_330] : memref<3x4x128xbf16, #tpu.memory_space<vmem>>, vector<1x4x128xbf16>
    %331 = vector.shape_cast %330 : vector<1x4x128xbf16> to vector<4x128xbf16>
    %cst_331 = arith.constant dense<0.000000e+00> : vector<8x128xf32>
    %332 = tpu.matmul %329, %331, %cst_331 {dimension_numbers = #tpu.dot_dimension_numbers<[1], [0], [0], [1], [0, 0, 1, 1], [], []>} : vector<8x4xbf16>, vector<4x128xbf16>, vector<8x128xf32> -> vector<8x128xf32>
    %333 = arith.addf %328, %332 : vector<8x128xf32>
    %334 = vector.extract_strided_slice %312 {offsets = [1, 0], sizes = [8, 4], strides = [1, 1]} : vector<9x8xbf16> to vector<8x4xbf16>
    %c1_332 = arith.constant 1 : index
    %c0_333 = arith.constant 0 : index
    %c0_334 = arith.constant 0 : index
    %335 = vector.load %arg7[%c1_332, %c0_333, %c0_334] : memref<3x4x128xbf16, #tpu.memory_space<vmem>>, vector<1x4x128xbf16>
    %336 = vector.shape_cast %335 : vector<1x4x128xbf16> to vector<4x128xbf16>
    %cst_335 = arith.constant dense<0.000000e+00> : vector<8x128xf32>
    %337 = tpu.matmul %334, %336, %cst_335 {dimension_numbers = #tpu.dot_dimension_numbers<[1], [0], [0], [1], [0, 0, 1, 1], [], []>} : vector<8x4xbf16>, vector<4x128xbf16>, vector<8x128xf32> -> vector<8x128xf32>
    %338 = arith.addf %333, %337 : vector<8x128xf32>
    %339 = vector.extract_strided_slice %314 {offsets = [1, 0], sizes = [8, 4], strides = [1, 1]} : vector<9x8xbf16> to vector<8x4xbf16>
    %c2_336 = arith.constant 2 : index
    %c0_337 = arith.constant 0 : index
    %c0_338 = arith.constant 0 : index
    %340 = vector.load %arg7[%c2_336, %c0_337, %c0_338] : memref<3x4x128xbf16, #tpu.memory_space<vmem>>, vector<1x4x128xbf16>
    %341 = vector.shape_cast %340 : vector<1x4x128xbf16> to vector<4x128xbf16>
    %cst_339 = arith.constant dense<0.000000e+00> : vector<8x128xf32>
    %342 = tpu.matmul %339, %341, %cst_339 {dimension_numbers = #tpu.dot_dimension_numbers<[1], [0], [0], [1], [0, 0, 1, 1], [], []>} : vector<8x4xbf16>, vector<4x128xbf16>, vector<8x128xf32> -> vector<8x128xf32>
    %343 = arith.addf %338, %342 : vector<8x128xf32>
    %344 = vector.broadcast %0 : vector<1x128xf32> to vector<8x128xf32>
    %345 = arith.addf %343, %344 : vector<8x128xf32>
    %cst_340 = arith.constant 1.000000e-01 : f32
    %346 = vector.broadcast %cst_340 : f32 to vector<8x128xf32>
    %347 = arith.mulf %346, %345 : vector<8x128xf32>
    %348 = arith.maximumf %345, %347 : vector<8x128xf32>
    %349 = arith.truncf %348 : vector<8x128xf32> to vector<8x128xbf16>
    %c0_341 = arith.constant 0 : index
    %c7_342 = arith.constant 7 : index
    %c0_343 = arith.constant 0 : index
    %c0_344 = arith.constant 0 : index
    %350 = vector.load %arg9[%c0_341, %c7_342, %c0_343, %c0_344] : memref<1x8x8x128xbf16, #tpu.memory_space<vmem>>, vector<1x1x8x128xbf16>
    %351 = vector.shape_cast %350 : vector<1x1x8x128xbf16> to vector<8x128xbf16>
    %352 = vector.shape_cast %349 : vector<8x128xbf16> to vector<1x1x8x128xbf16>
    tpu.vector_store %arg9[%c0_341, %c7_342, %c0_343, %c0_344], %352 {strides = array<i32>} : memref<1x8x8x128xbf16, #tpu.memory_space<vmem>>, vector<1x1x8x128xbf16>,
    return
  }
  func.func @transform_0(%arg0: i32, %arg1: i32, %arg2: i32) -> (i32, i32, i32, i32, i32) {
    %c0_i32 = arith.constant 0 : i32
    %c0_i32_0 = arith.constant 0 : i32
    %c0_i32_1 = arith.constant 0 : i32
    %c0_i32_2 = arith.constant 0 : i32
    return %arg0, %arg2, %c0_i32, %c0_i32_0, %c0_i32_1 : i32, i32, i32, i32, i32
  }
  func.func @transform_1(%arg0: i32, %arg1: i32, %arg2: i32) -> (i32, i32, i32, i32, i32) {
    %c1_i32 = arith.constant 1 : i32
    %c0_i32 = arith.constant 0 : i32
    %c0_i32_0 = arith.constant 0 : i32
    %c0_i32_1 = arith.constant 0 : i32
    return %arg0, %arg2, %c1_i32, %c0_i32, %c0_i32_0 : i32, i32, i32, i32, i32
  }
  func.func @transform_2(%arg0: i32, %arg1: i32, %arg2: i32) -> (i32, i32, i32, i32, i32) {
    %c1_i32 = arith.constant 1 : i32
    %0 = arith.addi %arg2, %c1_i32 : i32
    %c8_i32 = arith.constant 8 : i32
    %1 = arith.muli %0, %c8_i32 : i32
    %c0_i32 = arith.constant 0 : i32
    %c0_i32_0 = arith.constant 0 : i32
    %c0_i32_1 = arith.constant 0 : i32
    %c0_i32_2 = arith.constant 0 : i32
    return %arg0, %1, %c0_i32, %c0_i32_0, %c0_i32_1 : i32, i32, i32, i32, i32
  }
  func.func @transform_3(%arg0: i32, %arg1: i32, %arg2: i32) -> (i32, i32, i32) {
    %c0_i32 = arith.constant 0 : i32
    %c0_i32_0 = arith.constant 0 : i32
    %c0_i32_1 = arith.constant 0 : i32
    return %c0_i32, %c0_i32_0, %arg1 : i32, i32, i32
  }
  func.func @transform_4(%arg0: i32, %arg1: i32, %arg2: i32) -> (i32, i32, i32) {
    %c0_i32 = arith.constant 0 : i32
    %c0_i32_0 = arith.constant 0 : i32
    %c0_i32_1 = arith.constant 0 : i32
    return %c0_i32, %c0_i32_0, %arg1 : i32, i32, i32
  }
  func.func @transform_5(%arg0: i32, %arg1: i32, %arg2: i32) -> (i32, i32) {
    %c0_i32 = arith.constant 0 : i32
    %c0_i32_0 = arith.constant 0 : i32
    return %c0_i32, %arg1 : i32, i32
  }
  func.func @transform_6(%arg0: i32, %arg1: i32, %arg2: i32) -> (i32, i32, i32, i32) {
    %c0_i32 = arith.constant 0 : i32
    %c0_i32_0 = arith.constant 0 : i32
    return %arg0, %arg2, %c0_i32, %arg1 : i32, i32, i32, i32
  }
}

</mosaic_0001>

<bundles_post_ra>
// kernel: darknet_conv.1
= control target key start
LH: loop header
LB: loop body
LE: loop exit
PB: predicated region body
PF: predicated region fallthrough
CT: control target
= control target key end

     0   :  { %s3094_s21 = smov 0   ;;  %s3096_s22 = smov 0   ;;  %s3616_s0 = inlined_call_operand.vmem [shape: bf16[2,9,2,9,8], index: 0, kind: input, shape index: {}, may-alias: {0,1,2}]   ;;  %s3617_s1 = inlined_call_operand.vmem [shape: bf16[2,9,2,9,8], index: 1, kind: input, shape index: {}, may-alias: {0,1,2}]   ;;  %s3618_s2 = inlined_call_operand.vmem [shape: bf16[2,9,2,9,8], index: 2, kind: input, shape index: {}, may-alias: {0,1,2}]   ;;  %s3619_s3 = inlined_call_operand.vmem [shape: bf16[3,8,128], index: 3, kind: input, shape index: {}]   ;;  %s3620_s4 = inlined_call_operand.vmem [shape: bf16[3,4,128], index: 4, kind: input, shape index: {}]   ;;  %s3621_s5 = inlined_call_operand.vmem [shape: f32[1,128], index: 5, kind: input, shape index: {}]   ;;  %s3622_s6 = inlined_call_operand.vmem [shape: bf16[2,8,8,128], index: 6, kind: output, shape index: {}]  }
   0x1   :  { %s3098_s23 = smov 0   ;;  %s3100_s24 = smov 0  }
   0x2   :  { %s3102_s25 = smov 0  }
   0x3 LB: > { %s35_s26 = sadd.s32 1, %s3041_s24  ;;  %p51_p1 = scmp.ne.s32.totalorder %s3033_s22, %s3029_s21  ;;  %s3045_s25 = sphi %s3102_s25, %s16_s25   ;;  %s3041_s24 = sphi %s3100_s24, %s3629_s24   ;;  %s3037_s23 = sphi %s3098_s23, %s3628_s23   ;;  %s3033_s22 = sphi %s3096_s22, %s3627_s22   ;;  %s3029_s21 = sphi %s3094_s21, %s3626_s21  }
   0x4   : > { %p37_p0 = scmp.ge.s32.totalorder %s35_s26, 2  ;;  %p52_p2 = scmp.eq.s32.totalorder %s3045_s25, 0 }
   0x5   : > { %s44_s29 = sadd.s32 1, %s3033_s22  ;;  %p2584_p5 = scmp.ge.s32.totalorder %s3045_s25, 2 }
   0x6   : > { %s3631_s26 = smov (%p37_p0, %s35_s26), 0  ;;  %p3125_p3 = por %p52_p2, %p51_p1 }
   0x7   : > { %s39_s28 = ssub.s32 %s3041_s24, %s3631_s26  ;;  %265 = sbr.rel (%p2584_p5) target bundleno = 57 (0x39), region = 28 }
   0x8   : > { %p42_p4 = scmp.eq.s32.totalorder %s39_s28, 0 }
   0xa   : > { %s3133_s30 = scalar_select %p42_p4, %s3033_s22, %s44_s29  }
   0xc   : > { %268 = sbr.rel (!%p3125_p3) target bundleno = 34 (0x22), region = 32  ;;  %s270_s7 = sand.u32 (%p3125_p3), 1, %s3033_s22  }
   0xd   : > { %s2867_s8 = smul.u32 (%p3125_p3), 144, %s3041_s24  ;;  %s2585_s9 = sshll.u32 (%p3125_p3), %s270_s7, 6 }
   0xe   : > { %s3145_s13 = scalar_lea.vmem (%p3125_p3), [#allocation2], %s2585_s9   ;;  %s3147_s14 = smov (%p3125_p3), 0  }
   0xf   : > { %s3143_s12 = scalar_lea.vmem (%p3125_p3), %s3616_s0, %s2867_s8  }
  0x11 LB: >> { %v304_v0 = vld [vmem:[%s3143_s12] sm:$0xf]  ;;  %v306_v1 = vld [vmem:[%s3143_s12 + $0x10] sm:$0xf]  ;;  %v320_v8 = vld [vmem:[%s3143_s12 + $0x4] sm:$0xf]  ;;  %s3049_s14 = sphi %s3147_s14, %s298_s14  }
  0x12   : >> { %v308_v2 = vld [vmem:[%s3143_s12 + $0x20] sm:$0xf]  ;;  %305 = vst [vmem:[%s3145_s13] sm:$0xf] %v304_v0  ;;  %v310_v3 = vld [vmem:[%s3143_s12 + $0x30] sm:$0xf]  ;;  %s298_s14 = sadd.s32 1, %s3049_s14  }
  0x13   : >> { %307 = vst [vmem:[%s3145_s13 + $0x8] sm:$0xf] %v306_v1  ;;  %v312_v4 = vld [vmem:[%s3143_s12 + $0x40] sm:$0xf]  ;;  %v314_v5 = vld [vmem:[%s3143_s12 + $0x50] sm:$0xf] }
  0x14   : >> { %309 = vst [vmem:[%s3145_s13 + $0x10] sm:$0xf] %v308_v2  ;;  %v316_v6 = vld [vmem:[%s3143_s12 + $0x60] sm:$0xf]  ;;  %v318_v7 = vld [vmem:[%s3143_s12 + $0x70] sm:$0xf] }
  0x15   : >> { %311 = vst [vmem:[%s3145_s13 + $0x18] sm:$0xf] %v310_v3  ;;  %v322_v9 = vld [vmem:[%s3143_s12 + $0x14] sm:$0xf]  ;;  %v324_v10 = vld [vmem:[%s3143_s12 + $0x24] sm:$0xf] }
  0x16   : >> { %313 = vst [vmem:[%s3145_s13 + $0x20] sm:$0xf] %v312_v4  ;;  %v326_v11 = vld [vmem:[%s3143_s12 + $0x34] sm:$0xf]  ;;  %v328_v12 = vld [vmem:[%s3143_s12 + $0x44] sm:$0xf] }
  0x17   : >> { %315 = vst [vmem:[%s3145_s13 + $0x28] sm:$0xf] %v314_v5  ;;  %v330_v13 = vld [vmem:[%s3143_s12 + $0x54] sm:$0xf]  ;;  %v332_v14 = vld [vmem:[%s3143_s12 + $0x64] sm:$0xf] }
  0x18   : >> { %317 = vst [vmem:[%s3145_s13 + $0x30] sm:$0xf] %v316_v6  ;;  %v334_v15 = vld [vmem:[%s3143_s12 + $0x74] sm:$0xf]  ;;  %p297_p6 = scmp.ge.s32.totalorder %s298_s14, 1 }
  0x19   : >> { %319 = vst [vmem:[%s3145_s13 + $0x38] sm:$0xf] %v318_v7 }
  0x1a   : >> { %321 = vst [vmem:[%s3145_s13 + $0x4] sm:$0xf] %v320_v8 }
  0x1b   : >> { %323 = vst [vmem:[%s3145_s13 + $0xc] sm:$0xf] %v322_v9 }
  0x1c   : >> { %325 = vst [vmem:[%s3145_s13 + $0x14] sm:$0xf] %v324_v10 }
  0x1d   : >> { %327 = vst [vmem:[%s3145_s13 + $0x1c] sm:$0xf] %v326_v11  ;;  %300 = sbr.rel (!%p297_p6) target bundleno = 17 (0x11), region = 276 }
  0x1e   : >> { %329 = vst [vmem:[%s3145_s13 + $0x24] sm:$0xf] %v328_v12 }
  0x1f   : >> { %331 = vst [vmem:[%s3145_s13 + $0x2c] sm:$0xf] %v330_v13 }
  0x20   : >> { %333 = vst [vmem:[%s3145_s13 + $0x34] sm:$0xf] %v332_v14 }
  0x21   : >> { %335 = vst [vmem:[%s3145_s13 + $0x3c] sm:$0xf] %v334_v15 }
  0x22 PF: > { %493 = sbr.rel (!%p3125_p3) target bundleno = 57 (0x39), region = 94  ;;  %s495_s15 = sand.u32 (%p3125_p3), 1, %s3033_s22  }
  0x23   : > { %s2596_s16 = smul.u32 (%p3125_p3), 144, %s3041_s24  ;;  %s2595_s17 = sshll.u32 (%p3125_p3), %s495_s15, 6 }
  0x24   : > { %s3197_s29 = scalar_lea.vmem (%p3125_p3), [#allocation3], %s2595_s17   ;;  %s3203_s27 = smov (%p3125_p3), 0  }
  0x25   : > { %s3194_s20 = scalar_lea.vmem (%p3125_p3), %s3617_s1, %s2596_s16 }
  0x26   : > { %s2352_s28 = scalar_lea.vmem (%p3125_p3), %s3194_s20, 8  }
  0x27   : > { %s3624_s7 = smov %s2352_s28 }
  0x28 LB: >> { %v530_v16 = vld [vmem:[%s3053_s7] sm:$0xf]  ;;  %v532_v17 = vld [vmem:[%s3053_s7 + $0x10] sm:$0xf]  ;;  %v546_v24 = vld [vmem:[%s3053_s7 + $0x4] sm:$0xf]  ;;  %s3057_s27 = sphi %s3203_s27, %s524_s27   ;;  %s3053_s7 = sphi %s3624_s7, %s3625_s7  }
  0x29   : >> { %v534_v18 = vld [vmem:[%s3053_s7 + $0x20] sm:$0xf]  ;;  %531 = vst [vmem:[%s3197_s29] sm:$0xf] %v530_v16  ;;  %v536_v19 = vld [vmem:[%s3053_s7 + $0x30] sm:$0xf]  ;;  %s524_s27 = sadd.s32 1, %s3057_s27  }
  0x2a   : >> { %533 = vst [vmem:[%s3197_s29 + $0x8] sm:$0xf] %v532_v17  ;;  %v538_v20 = vld [vmem:[%s3053_s7 + $0x40] sm:$0xf]  ;;  %v540_v21 = vld [vmem:[%s3053_s7 + $0x50] sm:$0xf] }
  0x2b   : >> { %535 = vst [vmem:[%s3197_s29 + $0x10] sm:$0xf] %v534_v18  ;;  %v542_v22 = vld [vmem:[%s3053_s7 + $0x60] sm:$0xf]  ;;  %v544_v23 = vld [vmem:[%s3053_s7 + $0x70] sm:$0xf] }
  0x2c   : >> { %537 = vst [vmem:[%s3197_s29 + $0x18] sm:$0xf] %v536_v19  ;;  %v548_v25 = vld [vmem:[%s3053_s7 + $0x14] sm:$0xf]  ;;  %v550_v26 = vld [vmem:[%s3053_s7 + $0x24] sm:$0xf] }
  0x2d   : >> { %539 = vst [vmem:[%s3197_s29 + $0x20] sm:$0xf] %v538_v20  ;;  %v552_v27 = vld [vmem:[%s3053_s7 + $0x34] sm:$0xf]  ;;  %v554_v28 = vld [vmem:[%s3053_s7 + $0x44] sm:$0xf] }
  0x2e   : >> { %541 = vst [vmem:[%s3197_s29 + $0x28] sm:$0xf] %v540_v21  ;;  %v556_v29 = vld [vmem:[%s3053_s7 + $0x54] sm:$0xf]  ;;  %v558_v30 = vld [vmem:[%s3053_s7 + $0x64] sm:$0xf] }
  0x2f   : >> { %543 = vst [vmem:[%s3197_s29 + $0x30] sm:$0xf] %v542_v22  ;;  %v560_v31 = vld [vmem:[%s3053_s7 + $0x74] sm:$0xf]  ;;  %p523_p7 = scmp.ge.s32.totalorder %s524_s27, 1  ;;  %s3625_s7 = smov %s2352_s28 }
  0x30   : >> { %545 = vst [vmem:[%s3197_s29 + $0x38] sm:$0xf] %v544_v23 }
  0x31   : >> { %547 = vst [vmem:[%s3197_s29 + $0x4] sm:$0xf] %v546_v24 }
  0x32   : >> { %549 = vst [vmem:[%s3197_s29 + $0xc] sm:$0xf] %v548_v25 }
  0x33   : >> { %551 = vst [vmem:[%s3197_s29 + $0x14] sm:$0xf] %v550_v26 }
  0x34   : >> { %553 = vst [vmem:[%s3197_s29 + $0x1c] sm:$0xf] %v552_v27  ;;  %526 = sbr.rel (!%p523_p7) target bundleno = 40 (0x28), region = 298 }
  0x35   : >> { %555 = vst [vmem:[%s3197_s29 + $0x24] sm:$0xf] %v554_v28 }
  0x36   : >> { %557 = vst [vmem:[%s3197_s29 + $0x2c] sm:$0xf] %v556_v29 }
  0x37   : >> { %559 = vst [vmem:[%s3197_s29 + $0x34] sm:$0xf] %v558_v30 }
  0x38   : >> { %561 = vst [vmem:[%s3197_s29 + $0x3c] sm:$0xf] %v560_v31 }
  0x39 PF: > { %p2607_p8 = scmp.ge.s32.totalorder %s3045_s25, 1  ;;  %p734_p9 = scmp.lt.s32.totalorder %s3045_s25, 3 }
  0x3b   : > { %p735_p10 = pnand %p2607_p8, %p734_p9 }
  0x3c   : > { %s741_s12 = sand.u32 (!%p735_p10), 1, %s3029_s21   ;;  %p824_p11 = scmp.lt.s32.totalorder (!%p735_p10), %s3037_s23, 1 }
  0x3d   : > { %738 = sbr.rel (%p735_p10) target bundleno = 399 (0x18f), region = 160  ;;  %s2608_s15 = sshll.u32 (!%p735_p10), %s741_s12, 6 }
  0x3e   : > { %s3268_s21 = scalar_lea.vmem (!%p735_p10), [#allocation3], %s2608_s15  ;;  %s3271_s18 = scalar_lea.vmem (!%p735_p10), [#allocation2], %s2608_s15 }
  0x42   : > { %v2615_v32 = vld [vmem:[%s3619_s3 + $0x4] sm:$0xf]  ;;  %vm875_vm0 = vcmask 1043456   ;;  %v2618_v33 = vld [vmem:[%s3619_s3 + $0x8] sm:$0xf]  ;;  %vm871_vm1 = vcmask 64512  }
  0x43   : > { %v877_v34 = vsel %vm875_vm0, %v2615_v32, 0  ;;  %v917_v35 = vsel %vm875_vm0, %v2618_v33, 0  ;;  %v868_v36 = vld [vmem:[%s3619_s3] sm:$0xf]  ;;  %vm950_vm2 = vcmask 1041408   ;;  %vm946_vm3 = vcmask 31744  }
  0x44   : > { %886 = vmatpush.bf16.msra.mxu0 %v877_v34  ;;  %926 = vmatpush.bf16.msra.mxu2 %v917_v35  ;;  %v896_v37 = vsel %vm875_vm0, %v868_v36, 0  ;;  %v933_v38 = vld [vmem:[%s3620_s4] sm:$0x3]  ;;  %v2613_v40 = vld [vmem:[%s3271_s18 + $0x8] sm:$0xf]  ;;  %s3633_s23 = smov (!%p824_p11, %s3037_s23), 1 }
  0x45   : > { %905 = vmatpush.bf16.msra.mxu1 %v896_v37  ;;  %v863_v39 = vld [vmem:[%s3268_s21] sm:$0xf]  ;;  %v952_v42 = vsel %vm950_vm2, %v933_v38, 0  ;;  %v2643_v43 = vld [vmem:[%s3619_s3 + $0x4] sm:$0xf]  ;;  %s2842_s12 = sshll.u32 %s3633_s23, 5 }
  0x46   : > { %v861_v41 = vld [vmem:[%s3271_s18] sm:$0xf]  ;;  %v1058_v45 = vsel %vm875_vm0, %v2643_v43, 0  ;;  %v2843_v46 = vld [vmem:[%s3271_s18] sm:$0x10]  ;;  %961 = vmatpush.bf16.msra.mxu3 %v952_v42  ;;  %s3565_s15 = scalar_lea.vmem %s3622_s6, %s2842_s12  ;;  %s2869_s16 = smul.u32 144, %s3633_s23 }
  0x47   : > { %v2622_v44 = vld [vmem:[%s3271_s18] sm:$0xf]  ;;  %2616 = vmatmul.msk.bf16.vlgmr.msra.gmra.mxu0 %vm871_vm1, %v863_v39  ;;  %2619 = vmatmul.msk.bf16.vlgmr.msra.gmra.mxu2 %vm871_vm1, %v2613_v40  ;;  %v2631_v51 = vld [vmem:[%s3620_s4 + $0x4] sm:$0x3]  ;;  %v2634_v59 = vld [vmem:[%s3271_s18 + $0x8] sm:$0xf] }
  0x48   : > { %v2625_v47 = vld [vmem:[%s3620_s4 + $0x2] sm:$0x3]  ;;  %2617 = vmatmul.msk.bf16.vlgmr.msra.gmra.mxu1 %vm871_vm1, %v861_v41  ;;  %v2623_v48 = vor.u32 %v2843_v46, %v2622_v44  ;;  %1067 = vmatpush.bf16.msrb.mxu2 %v1058_v45  ;;  %v1020_v53 = vsel %vm950_vm2, %v2631_v51, 0  ;;  %v2844_v55 = vld [vmem:[%s3268_s21] sm:$0x10]  ;;  %s2841_s17 = sadd.s32 128, %s2869_s16 }
  0x49   : > { %v986_v49 = vsel %vm950_vm2, %v2625_v47, 0  ;;  %v1052_v50 = vld [vmem:[%s3619_s3] sm:$0xf]  ;;  %1029 = vmatpush.bf16.msrb.mxu1 %v1020_v53  ;;  %v2845_v60 = vld [vmem:[%s3271_s18 + $0x8] sm:$0x10]  ;;  %s832_s20 = scalar_lea.vmem %s3618_s2, %s2841_s17 }
  0x4a   : > { %995 = vmatpush.bf16.msrb.mxu0 %v986_v49  ;;  %v1077_v52 = vsel %vm875_vm0, %v1052_v50, 0  ;;  %v2628_v54 = vld [vmem:[%s3268_s21] sm:$0xf]  ;;  %v940_v56 = vshrl.u32 %v2623_v48, 16  ;;  %v942_v57 = vshll.u32 %v2623_v48, 16  ;;  %v2635_v0 = vor.u32 %v2845_v60, %v2634_v59 }
  0x4b   : > { %1086 = vmatpush.bf16.msrb.mxu3 %v1077_v52  ;;  %v2629_v58 = vor.u32 %v2844_v55, %v2628_v54  ;;  %v2653_v61 = vld [vmem:[%s3620_s4 + $0x2] sm:$0x3]  ;;  %v2646_v1 = vld [vmem:[%s3619_s3 + $0x8] sm:$0xf]  ;;  %v2659_v4 = vld [vmem:[%s3620_s4 + $0x4] sm:$0x3] }
  0x4c   : > { %v944_v62 = vrot.slane %v942_v57, 1  ;;  %v1163_v2 = vsel %vm950_vm2, %v2653_v61, 0  ;;  %v1097_v3 = vsel %vm875_vm0, %v2646_v1, 0  ;;  %v1113_v5 = vld [vmem:[%s3620_s4] sm:$0x3]  ;;  %v1012_v7 = vshll.u32 %v2635_v0, 16 }
  0x4d   : > { %v978_v63 = vshll.u32 %v2629_v58, 16  ;;  %1172 = vmatpush.bf16.msra.mxu2 %v1163_v2  ;;  %v976_v8 = vshrl.u32 %v2629_v58, 16  ;;  %v1196_v10 = vsel %vm950_vm2, %v2659_v4, 0  ;;  %v1130_v11 = vsel %vm950_vm2, %v1113_v5, 0  ;;  %v2675_v14 = vld [vmem:[%s3619_s3 + $0x8] sm:$0xf] }
  0x4e   : > { %v945_v6 = vor.u32 %v944_v62, %v940_v56  ;;  %1106 = vmatpush.bf16.msra.mxu0 %v1097_v3  ;;  %v1010_v12 = vshrl.u32 %v2635_v0, 16  ;;  %v1014_v13 = vrot.slane %v1012_v7, 1  ;;  %1139 = vmatpush.bf16.msra.mxu1 %v1130_v11  ;;  %v2639_v16 = vld [vmem:[%s3268_s21 + $0x8] sm:$0xf]  ;;  %v2672_v18 = vld [vmem:[%s3619_s3 + $0x4] sm:$0xf] }
  0x4f   : > { %v980_v9 = vrot.slane %v978_v63, 1  ;;  %v2656_v17 = vld [vmem:[%s3268_s21 + $0x8] sm:$0xf]  ;;  %v2847_v20 = vld [vmem:[%s3268_s21 + $0x8] sm:$0x10]  ;;  %v1271_v24 = vsel %vm875_vm0, %v2675_v14, 0 }
  0x50   : > { %2624 = vmatmul.msk.bf16.vlgmr.msra.gmra.mxu3 %vm946_vm3, %v945_v6  ;;  %v1015_v19 = vor.u32 %v1014_v13, %v1010_v12  ;;  %v2650_v21 = vld [vmem:[%s3271_s18 + $0x8] sm:$0xf]  ;;  %v1226_v22 = vld [vmem:[%s3619_s3] sm:$0xf]  ;;  %v2846_v23 = vld [vmem:[%s3271_s18 + $0x8] sm:$0x10]  ;;  %v2657_v27 = vor.u32 %v2847_v20, %v2656_v17 }
  0x51   : > { %1205 = vmatpush.bf16.msra.mxu3 %v1196_v10  ;;  %v981_v15 = vor.u32 %v980_v9, %v976_v8  ;;  %v1232_v25 = vsel %vm875_vm0, %v2672_v18, 0  ;;  %v1251_v26 = vsel %vm875_vm0, %v1226_v22, 0  ;;  %v2651_v28 = vor.u32 %v2846_v23, %v2650_v21  ;;  %v1287_v30 = vld [vmem:[%s3620_s4] sm:$0x3]  ;;  %v2637_v32 = vld [vmem:[%s3271_s18 + $0x8] sm:$0xf] }
  0x52   : > { %v1155_v29 = vshll.u32 %v2657_v27, 16  ;;  %v2662_v33 = vld [vmem:[%s3271_s18 + $0x10] sm:$0xf]  ;;  %v2848_v34 = vld [vmem:[%s3271_s18 + $0x10] sm:$0x10]  ;;  %v1304_v35 = vsel %vm950_vm2, %v1287_v30, 0 }
  0x53   : > { %v1122_v31 = vshll.u32 %v2651_v28, 16  ;;  %v1153_v36 = vshrl.u32 %v2657_v27, 16  ;;  %v1120_v38 = vshrl.u32 %v2651_v28, 16  ;;  %v2663_v40 = vor.u32 %v2848_v34, %v2662_v33  ;;  %v2701_v41 = vld [vmem:[%s3619_s3 + $0x4] sm:$0xf] }
  0x54   : > { %v1157_v37 = vrot.slane %v1155_v29, 1  ;;  %v2682_v43 = vld [vmem:[%s3620_s4 + $0x2] sm:$0x3]  ;;  %v2688_v44 = vld [vmem:[%s3620_s4 + $0x4] sm:$0x3]  ;;  %v1406_v48 = vsel %vm875_vm0, %v2701_v41, 0 }
  0x55   : > { %v1124_v39 = vrot.slane %v1122_v31, 1  ;;  %v2641_v45 = vld [vmem:[%s3271_s18 + $0x10] sm:$0xf]  ;;  %v1188_v47 = vshll.u32 %v2663_v40, 16  ;;  %v1337_v49 = vsel %vm950_vm2, %v2682_v43, 0  ;;  %v1370_v50 = vsel %vm950_vm2, %v2688_v44, 0 }
  0x56   : > { %v1158_v42 = vor.u32 %v1157_v37, %v1153_v36  ;;  %v1186_v51 = vshrl.u32 %v2663_v40, 16  ;;  %v1400_v53 = vld [vmem:[%s3619_s3] sm:$0xf]  ;;  %v2679_v55 = vld [vmem:[%s3271_s18 + $0x10] sm:$0xf] }
  0x57   : > { %2630 = vmatmul.msk.bf16.vlgmr.msrb.gmra.mxu0 %vm946_vm3, %v981_v15  ;;  %2644 = vmatmul.msk.bf16.vlgmr.msrb.gmra.mxu2 %vm871_vm1, %v2639_v16  ;;  %v1125_v46 = vor.u32 %v1124_v39, %v1120_v38  ;;  %v1190_v52 = vrot.slane %v1188_v47, 1  ;;  %v2849_v56 = vld [vmem:[%s3271_s18 + $0x10] sm:$0x10]  ;;  %v1425_v57 = vsel %vm875_vm0, %v1400_v53, 0  ;;  %v2668_v59 = vld [vmem:[%s3268_s21 + $0x10] sm:$0xf] }
  0x58   : > { %2636 = vmatmul.msk.bf16.vlgmr.msrb.gmra.mxu1 %vm946_vm3, %v1015_v19  ;;  %1280 = vmatpush.bf16.msrb.mxu2 %v1271_v24  ;;  %v2680_v58 = vor.u32 %v2849_v56, %v2679_v55  ;;  %v2670_v60 = vld [vmem:[%s3271_s18 + $0x18] sm:$0xf]  ;;  %v2711_v61 = vld [vmem:[%s3620_s4 + $0x2] sm:$0x3]  ;;  %v2666_v62 = vld [vmem:[%s3271_s18 + $0x10] sm:$0xf] }
  0x59   : > { %1241 = vmatpush.bf16.msrb.mxu0 %v1232_v25  ;;  %1260 = vmatpush.bf16.msrb.mxu1 %v1251_v26  ;;  %v1191_v54 = vor.u32 %v1190_v52, %v1186_v51  ;;  %v2704_v63 = vld [vmem:[%s3619_s3 + $0x8] sm:$0xf]  ;;  %v1461_v0 = vld [vmem:[%s3620_s4] sm:$0x3]  ;;  %v2685_v2 = vld [vmem:[%s3268_s21 + $0x10] sm:$0xf] }
  0x5a   : > { %v1296_v1 = vshll.u32 %v2680_v58, 16  ;;  %v2850_v3 = vld [vmem:[%s3268_s21 + $0x10] sm:$0x10]  ;;  %v2691_v4 = vld [vmem:[%s3271_s18 + $0x18] sm:$0xf]  ;;  %v1511_v6 = vsel %vm950_vm2, %v2711_v61, 0 }
  0x5b   : > { %v2851_v5 = vld [vmem:[%s3271_s18 + $0x18] sm:$0x10]  ;;  %v1445_v7 = vsel %vm875_vm0, %v2704_v63, 0  ;;  %v1478_v8 = vsel %vm950_vm2, %v1461_v0, 0  ;;  %v2686_v9 = vor.u32 %v2850_v3, %v2685_v2  ;;  %v1294_v10 = vshrl.u32 %v2680_v58, 16 }
  0x5c   : > { %v1298_v11 = vrot.slane %v1296_v1, 1  ;;  %v2692_v12 = vor.u32 %v2851_v5, %v2691_v4  ;;  %v2717_v14 = vld [vmem:[%s3620_s4 + $0x4] sm:$0x3]  ;;  %v2733_v22 = vld [vmem:[%s3619_s3 + $0x8] sm:$0xf] }
  0x5d   : > { %v1329_v13 = vshll.u32 %v2686_v9, 16  ;;  %v1544_v17 = vsel %vm950_vm2, %v2717_v14, 0  ;;  %v1327_v18 = vshrl.u32 %v2686_v9, 16  ;;  %v2730_v24 = vld [vmem:[%s3619_s3 + $0x4] sm:$0xf] }
  0x5e   : > { %v1299_v15 = vor.u32 %v1298_v11, %v1294_v10  ;;  %v1362_v16 = vshll.u32 %v2692_v12, 16  ;;  %v1360_v20 = vshrl.u32 %v2692_v12, 16  ;;  %v1574_v25 = vld [vmem:[%s3619_s3] sm:$0xf]  ;;  %v2697_v26 = vld [vmem:[%s3268_s21 + $0x18] sm:$0xf] }
  0x5f   : > { %v1331_v19 = vrot.slane %v1329_v13, 1  ;;  %v2714_v28 = vld [vmem:[%s3268_s21 + $0x18] sm:$0xf]  ;;  %v2853_v29 = vld [vmem:[%s3268_s21 + $0x18] sm:$0x10]  ;;  %v1580_v33 = vsel %vm875_vm0, %v2730_v24, 0 }
  0x60   : > { %2645 = vmatmul.msk.bf16.vlgmr.msrb.gmra.mxu3 %vm871_vm1, %v2637_v32  ;;  %v1364_v21 = vrot.slane %v1362_v16, 1  ;;  %v2708_v30 = vld [vmem:[%s3271_s18 + $0x18] sm:$0xf]  ;;  %v2852_v31 = vld [vmem:[%s3271_s18 + $0x18] sm:$0x10]  ;;  %v1619_v32 = vsel %vm875_vm0, %v2733_v22, 0 }
  0x61   : > { %1313 = vmatpush.bf16.msrb.mxu3 %v1304_v35  ;;  %v1332_v23 = vor.u32 %v1331_v19, %v1327_v18  ;;  %v1599_v34 = vsel %vm875_vm0, %v1574_v25, 0  ;;  %v2715_v35 = vor.u32 %v2853_v29, %v2714_v28  ;;  %v2709_v36 = vor.u32 %v2852_v31, %v2708_v30  ;;  %v1635_v38 = vld [vmem:[%s3620_s4] sm:$0x3]  ;;  %v2695_v40 = vld [vmem:[%s3271_s18 + $0x18] sm:$0xf] }
  0x62   : > { %v1365_v27 = vor.u32 %v1364_v21, %v1360_v20  ;;  %v2720_v41 = vld [vmem:[%s3271_s18 + $0x20] sm:$0xf]  ;;  %v1652_v43 = vsel %vm950_vm2, %v1635_v38, 0  ;;  %v2746_v52 = vld [vmem:[%s3620_s4 + $0x4] sm:$0x3] }
  0x63   : > { %v1503_v37 = vshll.u32 %v2715_v35, 16  ;;  %v1470_v39 = vshll.u32 %v2709_v36, 16  ;;  %v1501_v44 = vshrl.u32 %v2715_v35, 16  ;;  %v2740_v51 = vld [vmem:[%s3620_s4 + $0x2] sm:$0x3]  ;;  %v1718_v58 = vsel %vm950_vm2, %v2746_v52, 0 }
  0x64   : > { %v2699_v53 = vld [vmem:[%s3271_s18 + $0x20] sm:$0xf]  ;;  %v2855_v0 = vld [vmem:[%s3271_s18 + $0x20] sm:$0x10]  ;;  %v2728_v4 = vld [vmem:[%s3271_s18 + $0x28] sm:$0xf] }
  0x65   : > { %v1472_v47 = vrot.slane %v1470_v39, 1  ;;  %v1748_v61 = vld [vmem:[%s3619_s3] sm:$0xf]  ;;  %v2856_v11 = vld [vmem:[%s3268_s21 + $0x20] sm:$0x10] }
  0x66   : > { %v2737_v63 = vld [vmem:[%s3271_s18 + $0x20] sm:$0xf]  ;;  %v1773_v1 = vsel %vm875_vm0, %v1748_v61, 0  ;;  %v2749_v12 = vld [vmem:[%s3271_s18 + $0x28] sm:$0xf] }
  0x67   : > { %2647 = vmatmul.msk.bf16.vlgmr.msra.gmra.mxu0 %vm871_vm1, %v2641_v45  ;;  %2658 = vmatmul.msk.bf16.vlgmr.msra.gmra.mxu2 %vm946_vm3, %v1158_v42  ;;  %v2854_v42 = vld [vmem:[%s3271_s18 + $0x20] sm:$0x10]  ;;  %v1505_v45 = vrot.slane %v1503_v37, 1  ;;  %v2738_v2 = vor.u32 %v2855_v0, %v2737_v63  ;;  %v2726_v3 = vld [vmem:[%s3268_s21 + $0x20] sm:$0xf] }
  0x68   : > { %2652 = vmatmul.msk.bf16.vlgmr.msra.gmra.mxu1 %vm946_vm3, %v1125_v46  ;;  %1415 = vmatpush.bf16.msra.mxu2 %v1406_v48  ;;  %v1468_v46 = vshrl.u32 %v2709_v36, 16  ;;  %v2721_v48 = vor.u32 %v2854_v42, %v2720_v41  ;;  %v2769_v5 = vld [vmem:[%s3620_s4 + $0x2] sm:$0x3]  ;;  %v2857_v13 = vld [vmem:[%s3271_s18 + $0x28] sm:$0x10] }
  0x69   : > { %1346 = vmatpush.bf16.msra.mxu0 %v1337_v49  ;;  %1379 = vmatpush.bf16.msra.mxu1 %v1370_v50  ;;  %v2759_v49 = vld [vmem:[%s3619_s3 + $0x4] sm:$0xf]  ;;  %v1506_v50 = vor.u32 %v1505_v45, %v1501_v44  ;;  %v1644_v9 = vshll.u32 %v2738_v2, 16  ;;  %v2743_v10 = vld [vmem:[%s3268_s21 + $0x20] sm:$0xf]  ;;  %v1859_v14 = vsel %vm950_vm2, %v2769_v5, 0  ;;  %v2750_v20 = vor.u32 %v2857_v13, %v2749_v12 }
  0x6a   : > { %v1536_v55 = vshll.u32 %v2721_v48, 16  ;;  %v1754_v56 = vsel %vm875_vm0, %v2759_v49, 0  ;;  %v1642_v18 = vshrl.u32 %v2738_v2, 16  ;;  %v2775_v22 = vld [vmem:[%s3620_s4 + $0x4] sm:$0x3] }
  0x6b   : > { %v1646_v19 = vrot.slane %v1644_v9, 1  ;;  %v1710_v24 = vshll.u32 %v2750_v20, 16  ;;  %v1892_v25 = vsel %vm950_vm2, %v2775_v22, 0  ;;  %v1708_v28 = vshrl.u32 %v2750_v20, 16  ;;  %v2791_v30 = vld [vmem:[%s3619_s3 + $0x8] sm:$0xf] }
  0x6c   : > { %v2772_v36 = vld [vmem:[%s3268_s21 + $0x28] sm:$0xf]  ;;  %v2859_v37 = vld [vmem:[%s3268_s21 + $0x28] sm:$0x10]  ;;  %v2778_v49 = vld [vmem:[%s3271_s18 + $0x30] sm:$0xf] }
  0x6d   : > { %v1712_v29 = vrot.slane %v1710_v24, 1  ;;  %v2766_v38 = vld [vmem:[%s3271_s18 + $0x28] sm:$0xf]  ;;  %v2858_v39 = vld [vmem:[%s3271_s18 + $0x28] sm:$0x10] }
  0x6e   : > { %v2767_v44 = vor.u32 %v2858_v39, %v2766_v38  ;;  %v2795_v12 = vld [vmem:[%s3271_s18 + $0x30] sm:$0xf]  ;;  %v2861_v13 = vld [vmem:[%s3271_s18 + $0x30] sm:$0x10]  ;;  %v2786_v20 = vld [vmem:[%s3271_s18 + $0x38] sm:$0xf] }
  0x6f   : > { %v1713_v35 = vor.u32 %v1712_v29, %v1708_v28  ;;  %v2818_v24 = vld [vmem:[%s3619_s3 + $0x8] sm:$0xf]  ;;  %v2801_v29 = vld [vmem:[%s3268_s21 + $0x30] sm:$0xf] }
  0x70   : > { %2664 = vmatmul.msk.bf16.vlgmr.msra.gmra.mxu3 %vm946_vm3, %v1191_v54  ;;  %v1473_v54 = vor.u32 %v1472_v47, %v1468_v46  ;;  %v1983_v46 = vld [vmem:[%s3620_s4] sm:$0x3]  ;;  %v1818_v47 = vshll.u32 %v2767_v44, 16 }
  0x71   : > { %1434 = vmatpush.bf16.msra.mxu3 %v1425_v57  ;;  %v1685_v57 = vsel %vm950_vm2, %v2740_v51, 0  ;;  %v2000_v51 = vsel %vm950_vm2, %v1983_v46, 0 }
  0x77   : > { %2673 = vmatmul.msk.bf16.vlgmr.msrb.gmra.mxu0 %vm871_vm1, %v2668_v59  ;;  %2676 = vmatmul.msk.bf16.vlgmr.msrb.gmra.mxu2 %vm871_vm1, %v2670_v60  ;;  %v1534_v59 = vshrl.u32 %v2721_v48, 16  ;;  %v1538_v60 = vrot.slane %v1536_v55, 1  ;;  %v2753_v48 = vld [vmem:[%s3271_s18 + $0x28] sm:$0xf]  ;;  %v1820_v55 = vrot.slane %v1818_v47, 1 }
  0x78   : > { %2674 = vmatmul.msk.bf16.vlgmr.msrb.gmra.mxu1 %vm871_vm1, %v2666_v62  ;;  %1520 = vmatpush.bf16.msrb.mxu2 %v1511_v6  ;;  %v2724_v6 = vld [vmem:[%s3271_s18 + $0x20] sm:$0xf] }
  0x79   : > { %1454 = vmatpush.bf16.msrb.mxu0 %v1445_v7  ;;  %1487 = vmatpush.bf16.msrb.mxu1 %v1478_v8  ;;  %v1539_v62 = vor.u32 %v1538_v60, %v1534_v59  ;;  %v2762_v7 = vld [vmem:[%s3619_s3 + $0x8] sm:$0xf]  ;;  %v1809_v8 = vld [vmem:[%s3620_s4] sm:$0x3]  ;;  %v2798_v59 = vld [vmem:[%s3620_s4 + $0x2] sm:$0x3] }
  0x7a   : > { %v1826_v16 = vsel %vm950_vm2, %v1809_v8, 0  ;;  %v2804_v60 = vld [vmem:[%s3620_s4 + $0x4] sm:$0x3]  ;;  %v2095_v8 = vld [vmem:[%s3619_s3] sm:$0xf] }
  0x80   : > { %2681 = vmatmul.msk.bf16.vlgmr.msrb.gmra.mxu3 %vm946_vm3, %v1299_v15  ;;  %v1793_v15 = vsel %vm875_vm0, %v2762_v7, 0 }
  0x81   : > { %1553 = vmatpush.bf16.msrb.mxu3 %v1544_v17  ;;  %v2744_v17 = vor.u32 %v2856_v11, %v2743_v10 }
  0x83   : > { %v1677_v21 = vshll.u32 %v2744_v17, 16 }
  0x87   : > { %2687 = vmatmul.msk.bf16.vlgmr.msra.gmra.mxu0 %vm946_vm3, %v1332_v23  ;;  %2702 = vmatmul.msk.bf16.vlgmr.msra.gmra.mxu2 %vm871_vm1, %v2697_v26  ;;  %v1647_v23 = vor.u32 %v1646_v19, %v1642_v18  ;;  %v1675_v26 = vshrl.u32 %v2744_v17, 16  ;;  %v2784_v19 = vld [vmem:[%s3268_s21 + $0x30] sm:$0xf] }
  0x88   : > { %2693 = vmatmul.msk.bf16.vlgmr.msra.gmra.mxu1 %vm946_vm3, %v1365_v27  ;;  %1628 = vmatpush.bf16.msra.mxu2 %v1619_v32  ;;  %v1679_v27 = vrot.slane %v1677_v21, 1  ;;  %v2788_v32 = vld [vmem:[%s3619_s3 + $0x4] sm:$0xf]  ;;  %v2825_v21 = vld [vmem:[%s3620_s4 + $0x2] sm:$0x3] }
  0x89   : > { %1589 = vmatpush.bf16.msra.mxu0 %v1580_v33  ;;  %1608 = vmatpush.bf16.msra.mxu1 %v1599_v34  ;;  %v1922_v33 = vld [vmem:[%s3619_s3] sm:$0xf]  ;;  %v2755_v34 = vld [vmem:[%s3268_s21 + $0x28] sm:$0xf]  ;;  %v1928_v41 = vsel %vm875_vm0, %v2788_v32, 0 }
  0x8a   : > { %v1680_v31 = vor.u32 %v1679_v27, %v1675_v26  ;;  %v1947_v42 = vsel %vm875_vm0, %v1922_v33, 0  ;;  %v2807_v32 = vld [vmem:[%s3271_s18 + $0x38] sm:$0xf]  ;;  %v2863_v33 = vld [vmem:[%s3271_s18 + $0x38] sm:$0x10] }
  0x90   : > { %2703 = vmatmul.msk.bf16.vlgmr.msra.gmra.mxu3 %vm871_vm1, %v2695_v40  ;;  %v1967_v40 = vsel %vm875_vm0, %v2791_v30, 0  ;;  %v2862_v30 = vld [vmem:[%s3268_s21 + $0x30] sm:$0x10] }
  0x91   : > { %1661 = vmatpush.bf16.msra.mxu3 %v1652_v43  ;;  %v2773_v43 = vor.u32 %v2859_v37, %v2772_v36  ;;  %v3549_v36 = vld [vmem:[%s3621_s5] ss:$0 sm:$0xff]  ;;  %v2140_v37 = vsel %vm875_vm0, %v2818_v24, 0  ;;  %v2802_v39 = vor.u32 %v2862_v30, %v2801_v29 }
  0x93   : > { %v1851_v45 = vshll.u32 %v2773_v43, 16  ;;  %v1849_v52 = vshrl.u32 %v2773_v43, 16  ;;  %v2808_v43 = vor.u32 %v2863_v33, %v2807_v32  ;;  %v2025_v47 = vshll.u32 %v2802_v39, 16  ;;  %v2093_v33 = vld [vmem:[%s832_s20] sm:$0xf] }
  0x97   : > { %2705 = vmatmul.msk.bf16.vlgmr.msrb.gmra.mxu0 %vm871_vm1, %v2699_v53  ;;  %2716 = vmatmul.msk.bf16.vlgmr.msrb.gmra.mxu2 %vm946_vm3, %v1506_v50  ;;  %v2860_v50 = vld [vmem:[%s3271_s18 + $0x30] sm:$0x10]  ;;  %v1853_v53 = vrot.slane %v1851_v45, 1 }
  0x98   : > { %2710 = vmatmul.msk.bf16.vlgmr.msrb.gmra.mxu1 %vm946_vm3, %v1473_v54  ;;  %1763 = vmatpush.bf16.msrb.mxu2 %v1754_v56  ;;  %v1816_v54 = vshrl.u32 %v2767_v44, 16  ;;  %v2779_v56 = vor.u32 %v2860_v50, %v2778_v49 }
  0x99   : > { %1694 = vmatpush.bf16.msrb.mxu0 %v1685_v57  ;;  %1727 = vmatpush.bf16.msrb.mxu1 %v1718_v58  ;;  %v2815_v57 = vld [vmem:[%s3619_s3 + $0x4] sm:$0xf]  ;;  %v1854_v58 = vor.u32 %v1853_v53, %v1849_v52  ;;  %v2058_v52 = vshll.u32 %v2808_v43, 16 }
  0x9a   : > { %v1821_v63 = vor.u32 %v1820_v55, %v1816_v54  ;;  %v1884_v0 = vshll.u32 %v2779_v56, 16  ;;  %v2101_v2 = vsel %vm875_vm0, %v2815_v57, 0  ;;  %v1882_v5 = vshrl.u32 %v2779_v56, 16 }
  0x9b   : > { %v2023_v56 = vshrl.u32 %v2802_v39, 16  ;;  %v2027_v57 = vrot.slane %v2025_v47, 1 }
  0xa0   : > { %2722 = vmatmul.msk.bf16.vlgmr.msrb.gmra.mxu3 %vm946_vm3, %v1539_v62  ;;  %v2757_v62 = vld [vmem:[%s3271_s18 + $0x30] sm:$0xf] }
  0xa1   : > { %1782 = vmatpush.bf16.msrb.mxu3 %v1773_v1 }
  0xa7   : > { %2731 = vmatmul.msk.bf16.vlgmr.msra.gmra.mxu0 %vm871_vm1, %v2726_v3  ;;  %2734 = vmatmul.msk.bf16.vlgmr.msra.gmra.mxu2 %vm871_vm1, %v2728_v4  ;;  %v2033_v3 = vsel %vm950_vm2, %v2798_v59, 0  ;;  %v2066_v4 = vsel %vm950_vm2, %v2804_v60, 0  ;;  %v2056_v59 = vshrl.u32 %v2808_v43, 16  ;;  %v2060_v60 = vrot.slane %v2058_v52, 1 }
  0xa8   : > { %2732 = vmatmul.msk.bf16.vlgmr.msra.gmra.mxu1 %vm871_vm1, %v2724_v6  ;;  %1868 = vmatpush.bf16.msra.mxu2 %v1859_v14  ;;  %v1886_v6 = vrot.slane %v1884_v0, 1 }
  0xa9   : > { %1802 = vmatpush.bf16.msra.mxu0 %v1793_v15  ;;  %1835 = vmatpush.bf16.msra.mxu1 %v1826_v16  ;;  %v2120_v15 = vsel %vm875_vm0, %v2095_v8, 0  ;;  %v2796_v16 = vor.u32 %v2861_v13, %v2795_v12 }
  0xaa   : > { %v1887_v10 = vor.u32 %v1886_v6, %v1882_v5  ;;  %v2822_v6 = vld [vmem:[%s3271_s18 + $0x38] sm:$0xf] }
  0xab   : > { %v1992_v28 = vshll.u32 %v2796_v16, 16 }
  0xb0   : > { %2739 = vmatmul.msk.bf16.vlgmr.msra.gmra.mxu3 %vm946_vm3, %v1647_v23  ;;  %v2782_v23 = vld [vmem:[%s3271_s18 + $0x30] sm:$0xf] }
  0xb1   : > { %1901 = vmatpush.bf16.msra.mxu3 %v1892_v25  ;;  %v2156_v25 = vld [vmem:[%s3620_s4] sm:$0x3] }
  0xb2   : > { %v2173_v38 = vsel %vm950_vm2, %v2156_v25, 0 }
  0xb7   : > { %2745 = vmatmul.msk.bf16.vlgmr.msrb.gmra.mxu0 %vm946_vm3, %v1680_v31  ;;  %2760 = vmatmul.msk.bf16.vlgmr.msrb.gmra.mxu2 %vm871_vm1, %v2755_v34  ;;  %v2206_v34 = vsel %vm950_vm2, %v2825_v21, 0 }
  0xb8   : > { %2751 = vmatmul.msk.bf16.vlgmr.msrb.gmra.mxu1 %vm946_vm3, %v1713_v35  ;;  %1976 = vmatpush.bf16.msrb.mxu2 %v1967_v40 }
  0xb9   : > { %1937 = vmatpush.bf16.msrb.mxu0 %v1928_v41  ;;  %1956 = vmatpush.bf16.msrb.mxu1 %v1947_v42  ;;  %v1990_v41 = vshrl.u32 %v2796_v16, 16  ;;  %v1994_v42 = vrot.slane %v1992_v28, 1 }
  0xc0   : > { %2761 = vmatmul.msk.bf16.vlgmr.msrb.gmra.mxu3 %vm871_vm1, %v2753_v48  ;;  %v2831_v48 = vld [vmem:[%s3620_s4 + $0x4] sm:$0x3] }
  0xc1   : > { %2009 = vmatpush.bf16.msrb.mxu3 %v2000_v51  ;;  %v1995_v51 = vor.u32 %v1994_v42, %v1990_v41  ;;  %v2239_v55 = vsel %vm950_vm2, %v2831_v48, 0 }
  0xc4   : > { %v888_v61 = vpop.f32.mrf.mxu0 }
  0xc5   : > { %v907_v1 = vpop.f32.mrf.mxu1 }
  0xc6   : > { %v908_v14 = vadd.f32 %v907_v1, %v888_v61  ;;  %v2813_v1 = vld [vmem:[%s3268_s21 + $0x38] sm:$0xf] }
  0xc7   : > { %2763 = vmatmul.msk.bf16.vlgmr.msra.gmra.mxu0 %vm871_vm1, %v2757_v62  ;;  %2774 = vmatmul.msk.bf16.vlgmr.msra.gmra.mxu2 %vm946_vm3, %v1854_v58 }
  0xc8   : > { %2768 = vmatmul.msk.bf16.vlgmr.msra.gmra.mxu1 %vm946_vm3, %v1821_v63  ;;  %2110 = vmatpush.bf16.msra.mxu2 %v2101_v2  ;;  %v2028_v63 = vor.u32 %v2027_v57, %v2023_v56  ;;  %v2061_v2 = vor.u32 %v2060_v60, %v2056_v59 }
  0xc9   : > { %2042 = vmatpush.bf16.msra.mxu0 %v2033_v3  ;;  %2075 = vmatpush.bf16.msra.mxu1 %v2066_v4  ;;  %v2828_v3 = vld [vmem:[%s3268_s21 + $0x38] sm:$0xf]  ;;  %v2865_v4 = vld [vmem:[%s3268_s21 + $0x38] sm:$0x10] }
  0xca   : > { %v928_v7 = vpop.f32.mrf.mxu2  ;;  %v2829_v8 = vor.u32 %v2865_v4, %v2828_v3 }
  0xcb   : > { %v932_v17 = vadd.f32 %v928_v7, %v908_v14  ;;  %v2864_v7 = vld [vmem:[%s3271_s18 + $0x38] sm:$0x10] }
  0xcc   : > { %v890_v9 = vpop.f32.mrf.mxu0  ;;  %v2198_v13 = vshll.u32 %v2829_v8, 16  ;;  %v2196_v21 = vshrl.u32 %v2829_v8, 16 }
  0xcd   : > { %v909_v11 = vpop.f32.mrf.mxu1 }
  0xd0   : > { %2780 = vmatmul.msk.bf16.vlgmr.msra.gmra.mxu3 %vm946_vm3, %v1887_v10  ;;  %v2823_v10 = vor.u32 %v2864_v7, %v2822_v6 }
  0xd1   : > { %2129 = vmatpush.bf16.msra.mxu3 %v2120_v15 }
  0xd2   : > { %v930_v18 = vpop.f32.mrf.mxu2  ;;  %v2165_v16 = vshll.u32 %v2823_v10, 16  ;;  %v2163_v25 = vshrl.u32 %v2823_v10, 16 }
  0xd3   : > { %v963_v22 = vpop.f32.mrf.mxu3  ;;  %v2811_v18 = vld [vmem:[%s3271_s18 + $0x38] sm:$0xf] }
  0xd4   : > { %v967_v26 = vadd.f32 %v963_v22, %v932_v17  ;;  %v997_v27 = vpop.f32.mrf.mxu0  ;;  %v2200_v22 = vrot.slane %v2198_v13, 1 }
  0xd5   : > { %v1031_v31 = vpop.f32.mrf.mxu1 }
  0xd6   : > { %v1001_v35 = vadd.f32 %v997_v27, %v967_v26  ;;  %v2167_v26 = vrot.slane %v2165_v16, 1  ;;  %v2201_v30 = vor.u32 %v2200_v22, %v2196_v21 }
  0xd7   : > { %2789 = vmatmul.msk.bf16.vlgmr.msrb.gmra.mxu0 %vm871_vm1, %v2784_v19  ;;  %2792 = vmatmul.msk.bf16.vlgmr.msrb.gmra.mxu2 %vm871_vm1, %v2786_v20  ;;  %v2834_v19 = vld [vmem:[%s832_s20] sm:$0xf]  ;;  %v2866_v20 = vld [vmem:[%s832_s20] sm:$0x10] }
  0xd8   : > { %v1035_v40 = vadd.f32 %v1031_v31, %v1001_v35  ;;  %2790 = vmatmul.msk.bf16.vlgmr.msrb.gmra.mxu1 %vm871_vm1, %v2782_v23  ;;  %2215 = vmatpush.bf16.msrb.mxu2 %v2206_v34  ;;  %v2835_v24 = vor.u32 %v2866_v20, %v2834_v19  ;;  %v2168_v35 = vor.u32 %v2167_v26, %v2163_v25 }
  0xd9   : > { %2149 = vmatpush.bf16.msrb.mxu0 %v2140_v37  ;;  %2182 = vmatpush.bf16.msrb.mxu1 %v2173_v38 }
  0xda   : > { %v1039_v44 = vadd.f32 %v3549_v36, %v1035_v40  ;;  %v1069_v45 = vpop.f32.mrf.mxu2  ;;  %v2231_v34 = vshll.u32 %v2835_v24, 16  ;;  %v2229_v40 = vshrl.u32 %v2835_v24, 16 }
  0xdb   : > { %v965_v46 = vpop.f32.mrf.mxu3 }
  0xdc   : > { %v1040_v49 = vmul.f32 0.1, %v1039_v44  ;;  %v999_v50 = vpop.f32.mrf.mxu0  ;;  %v2233_v41 = vrot.slane %v2231_v34, 1 }
  0xdd   : > { %v1033_v53 = vpop.f32.mrf.mxu1 }
  0xde   : > { %v1041_v54 = vmax.f32 %v1039_v44, %v1040_v49  ;;  %v2234_v47 = vor.u32 %v2233_v41, %v2229_v40 }
  0xe0   : > { %v1042_v58 = vpack.c.bf16 %v1041_v54, %v1041_v54  ;;  %2797 = vmatmul.msk.bf16.vlgmr.msrb.gmra.mxu3 %vm946_vm3, %v1995_v51 }
  0xe1   : > { %2248 = vmatpush.bf16.msrb.mxu3 %v2239_v55 }
  0xe2   : > { %1043 = vst [vmem:[%s3565_s15] sm:$0xf] %v1042_v58  ;;  %v1071_v61 = vpop.f32.mrf.mxu2 }
  0xe3   : > { %v1088_v62 = vpop.f32.mrf.mxu3 }
  0xe4   : > { %v1108_v0 = vpop.f32.mrf.mxu0  ;;  %v1089_v9 = vadd.f32 %v1088_v62, %v1069_v45 }
  0xe5   : > { %v1141_v5 = vpop.f32.mrf.mxu1 }
  0xe6   : > { %v1112_v14 = vadd.f32 %v1108_v0, %v1089_v9 }
  0xe7   : > { %2803 = vmatmul.msk.bf16.vlgmr.msra.gmra.mxu0 %vm946_vm3, %v2028_v63  ;;  %2816 = vmatmul.msk.bf16.vlgmr.msra.gmra.mxu2 %vm871_vm1, %v2813_v1 }
  0xe8   : > { %2809 = vmatmul.msk.bf16.vlgmr.msra.gmra.mxu1 %vm946_vm3, %v2061_v2  ;;  %v1145_v23 = vadd.f32 %v1141_v5, %v1112_v14 }
  0xea   : > { %v1174_v11 = vpop.f32.mrf.mxu2 }
  0xeb   : > { %v1090_v12 = vpop.f32.mrf.mxu3  ;;  %v1178_v27 = vadd.f32 %v1174_v11, %v1145_v23 }
  0xec   : > { %v1110_v15 = vpop.f32.mrf.mxu0 }
  0xed   : > { %v1143_v17 = vpop.f32.mrf.mxu1 }
  0xf0   : > { %2817 = vmatmul.msk.bf16.vlgmr.msra.gmra.mxu3 %vm871_vm1, %v2811_v18 }
  0xf2   : > { %v1176_v28 = vpop.f32.mrf.mxu2 }
  0xf3   : > { %v1207_v29 = vpop.f32.mrf.mxu3 }
  0xf4   : > { %v1211_v31 = vadd.f32 %v1207_v29, %v1178_v27  ;;  %v1243_v32 = vpop.f32.mrf.mxu0 }
  0xf5   : > { %v1262_v37 = vpop.f32.mrf.mxu1 }
  0xf6   : > { %v1212_v38 = vadd.f32 %v3549_v36, %v1211_v31  ;;  %v1263_v49 = vadd.f32 %v1262_v37, %v1243_v32 }
  0xf7   : > { %2819 = vmatmul.msk.bf16.vlgmr.msrb.gmra.mxu0 %vm871_vm1, %v2093_v33  ;;  %2830 = vmatmul.msk.bf16.vlgmr.msrb.gmra.mxu2 %vm946_vm3, %v2201_v30 }
  0xf8   : > { %v1213_v39 = vmul.f32 0.1, %v1212_v38  ;;  %2824 = vmatmul.msk.bf16.vlgmr.msrb.gmra.mxu1 %vm946_vm3, %v2168_v35 }
  0xfa   : > { %v1214_v42 = vmax.f32 %v1212_v38, %v1213_v39  ;;  %v1282_v43 = vpop.f32.mrf.mxu2 }
  0xfb   : > { %v1209_v44 = vpop.f32.mrf.mxu3  ;;  %v1286_v50 = vadd.f32 %v1282_v43, %v1263_v49 }
  0xfc   : > { %v1215_v45 = vpack.c.bf16 %v1214_v42, %v1214_v42  ;;  %v1245_v46 = vpop.f32.mrf.mxu0 }
  0xfd   : > { %v1264_v48 = vpop.f32.mrf.mxu1 }
  0xfe   : > { %2665 = vst [vmem:[%s3565_s15 + $0x4] sm:$0xf] %v1215_v45 }
 0x100   : > { %2836 = vmatmul.msk.bf16.vlgmr.msrb.gmra.mxu3 %vm946_vm3, %v2234_v47 }
 0x102   : > { %v1284_v51 = vpop.f32.mrf.mxu2 }
 0x103   : > { %v1315_v52 = vpop.f32.mrf.mxu3 }
 0x104   : > { %v1319_v53 = vadd.f32 %v1315_v52, %v1286_v50  ;;  %v1348_v54 = vpop.f32.mrf.mxu0 }
 0x105   : > { %v1381_v55 = vpop.f32.mrf.mxu1 }
 0x106   : > { %v1352_v56 = vadd.f32 %v1348_v54, %v1319_v53 }
 0x108   : > { %v1385_v57 = vadd.f32 %v1381_v55, %v1352_v56 }
 0x10a   : > { %v1386_v58 = vadd.f32 %v3549_v36, %v1385_v57  ;;  %v1417_v59 = vpop.f32.mrf.mxu2 }
 0x10b   : > { %v1317_v60 = vpop.f32.mrf.mxu3 }
 0x10c   : > { %v1387_v61 = vmul.f32 0.1, %v1386_v58  ;;  %v1350_v62 = vpop.f32.mrf.mxu0 }
 0x10d   : > { %v1383_v63 = vpop.f32.mrf.mxu1 }
 0x10e   : > { %v1388_v0 = vmax.f32 %v1386_v58, %v1387_v61 }
 0x110   : > { %v1389_v1 = vpack.c.bf16 %v1388_v0, %v1388_v0 }
 0x112   : > { %2694 = vst [vmem:[%s3565_s15 + $0x8] sm:$0xf] %v1389_v1  ;;  %v1419_v2 = vpop.f32.mrf.mxu2 }
 0x113   : > { %v1436_v3 = vpop.f32.mrf.mxu3 }
 0x114   : > { %v1456_v4 = vpop.f32.mrf.mxu0  ;;  %v1437_v6 = vadd.f32 %v1436_v3, %v1417_v59 }
 0x115   : > { %v1489_v5 = vpop.f32.mrf.mxu1 }
 0x116   : > { %v1460_v9 = vadd.f32 %v1456_v4, %v1437_v6 }
 0x118   : > { %v1493_v12 = vadd.f32 %v1489_v5, %v1460_v9 }
 0x11a   : > { %v1522_v7 = vpop.f32.mrf.mxu2 }
 0x11b   : > { %v1438_v8 = vpop.f32.mrf.mxu3  ;;  %v1526_v13 = vadd.f32 %v1522_v7, %v1493_v12 }
 0x11c   : > { %v1458_v10 = vpop.f32.mrf.mxu0 }
 0x11d   : > { %v1491_v11 = vpop.f32.mrf.mxu1 }
 0x122   : > { %v1524_v14 = vpop.f32.mrf.mxu2 }
 0x123   : > { %v1555_v15 = vpop.f32.mrf.mxu3 }
 0x124   : > { %v1559_v16 = vadd.f32 %v1555_v15, %v1526_v13  ;;  %v1591_v17 = vpop.f32.mrf.mxu0 }
 0x125   : > { %v1610_v18 = vpop.f32.mrf.mxu1 }
 0x126   : > { %v1560_v19 = vadd.f32 %v3549_v36, %v1559_v16  ;;  %v1611_v27 = vadd.f32 %v1610_v18, %v1591_v17 }
 0x128   : > { %v1561_v20 = vmul.f32 0.1, %v1560_v19 }
 0x12a   : > { %v1562_v21 = vmax.f32 %v1560_v19, %v1561_v20  ;;  %v1630_v22 = vpop.f32.mrf.mxu2 }
 0x12b   : > { %v1557_v23 = vpop.f32.mrf.mxu3  ;;  %v1634_v28 = vadd.f32 %v1630_v22, %v1611_v27 }
 0x12c   : > { %v1563_v24 = vpack.c.bf16 %v1562_v21, %v1562_v21  ;;  %v1593_v25 = vpop.f32.mrf.mxu0 }
 0x12d   : > { %v1612_v26 = vpop.f32.mrf.mxu1 }
 0x12e   : > { %2723 = vst [vmem:[%s3565_s15 + $0xc] sm:$0xf] %v1563_v24 }
 0x132   : > { %v1632_v29 = vpop.f32.mrf.mxu2 }
 0x133   : > { %v1663_v30 = vpop.f32.mrf.mxu3 }
 0x134   : > { %v1667_v31 = vadd.f32 %v1663_v30, %v1634_v28  ;;  %v1696_v32 = vpop.f32.mrf.mxu0 }
 0x135   : > { %v1729_v33 = vpop.f32.mrf.mxu1 }
 0x136   : > { %v1700_v34 = vadd.f32 %v1696_v32, %v1667_v31 }
 0x138   : > { %v1733_v35 = vadd.f32 %v1729_v33, %v1700_v34 }
 0x13a   : > { %v1734_v37 = vadd.f32 %v3549_v36, %v1733_v35  ;;  %v1765_v38 = vpop.f32.mrf.mxu2 }
 0x13b   : > { %v1665_v39 = vpop.f32.mrf.mxu3 }
 0x13c   : > { %v1735_v40 = vmul.f32 0.1, %v1734_v37  ;;  %v1698_v41 = vpop.f32.mrf.mxu0 }
 0x13d   : > { %v1731_v42 = vpop.f32.mrf.mxu1 }
 0x13e   : > { %v1736_v43 = vmax.f32 %v1734_v37, %v1735_v40 }
 0x140   : > { %v1737_v44 = vpack.c.bf16 %v1736_v43, %v1736_v43 }
 0x142   : > { %2752 = vst [vmem:[%s3565_s15 + $0x10] sm:$0xf] %v1737_v44  ;;  %v1767_v45 = vpop.f32.mrf.mxu2 }
 0x143   : > { %v1784_v46 = vpop.f32.mrf.mxu3 }
 0x144   : > { %v1804_v47 = vpop.f32.mrf.mxu0  ;;  %v1785_v49 = vadd.f32 %v1784_v46, %v1765_v38 }
 0x145   : > { %v1837_v48 = vpop.f32.mrf.mxu1 }
 0x146   : > { %v1808_v52 = vadd.f32 %v1804_v47, %v1785_v49 }
 0x148   : > { %v1841_v55 = vadd.f32 %v1837_v48, %v1808_v52 }
 0x14a   : > { %v1870_v50 = vpop.f32.mrf.mxu2 }
 0x14b   : > { %v1786_v51 = vpop.f32.mrf.mxu3  ;;  %v1874_v56 = vadd.f32 %v1870_v50, %v1841_v55 }
 0x14c   : > { %v1806_v53 = vpop.f32.mrf.mxu0 }
 0x14d   : > { %v1839_v54 = vpop.f32.mrf.mxu1 }
 0x152   : > { %v1872_v57 = vpop.f32.mrf.mxu2 }
 0x153   : > { %v1903_v58 = vpop.f32.mrf.mxu3 }
 0x154   : > { %v1907_v59 = vadd.f32 %v1903_v58, %v1874_v56  ;;  %v1939_v60 = vpop.f32.mrf.mxu0 }
 0x155   : > { %v1958_v61 = vpop.f32.mrf.mxu1 }
 0x156   : > { %v1908_v62 = vadd.f32 %v3549_v36, %v1907_v59  ;;  %v1959_v6 = vadd.f32 %v1958_v61, %v1939_v60 }
 0x158   : > { %v1909_v63 = vmul.f32 0.1, %v1908_v62 }
 0x15a   : > { %v1910_v0 = vmax.f32 %v1908_v62, %v1909_v63  ;;  %v1978_v1 = vpop.f32.mrf.mxu2 }
 0x15b   : > { %v1905_v2 = vpop.f32.mrf.mxu3  ;;  %v1982_v7 = vadd.f32 %v1978_v1, %v1959_v6 }
 0x15c   : > { %v1911_v3 = vpack.c.bf16 %v1910_v0, %v1910_v0  ;;  %v1941_v4 = vpop.f32.mrf.mxu0 }
 0x15d   : > { %v1960_v5 = vpop.f32.mrf.mxu1 }
 0x15e   : > { %2781 = vst [vmem:[%s3565_s15 + $0x14] sm:$0xf] %v1911_v3 }
 0x162   : > { %v1980_v8 = vpop.f32.mrf.mxu2 }
 0x163   : > { %v2011_v9 = vpop.f32.mrf.mxu3 }
 0x164   : > { %v2015_v10 = vadd.f32 %v2011_v9, %v1982_v7  ;;  %v2044_v11 = vpop.f32.mrf.mxu0 }
 0x165   : > { %v2077_v12 = vpop.f32.mrf.mxu1 }
 0x166   : > { %v2048_v13 = vadd.f32 %v2044_v11, %v2015_v10 }
 0x168   : > { %v2081_v14 = vadd.f32 %v2077_v12, %v2048_v13 }
 0x16a   : > { %v2082_v15 = vadd.f32 %v3549_v36, %v2081_v14  ;;  %v2112_v16 = vpop.f32.mrf.mxu2 }
 0x16b   : > { %v2013_v17 = vpop.f32.mrf.mxu3 }
 0x16c   : > { %v2083_v18 = vmul.f32 0.1, %v2082_v15  ;;  %v2046_v19 = vpop.f32.mrf.mxu0 }
 0x16d   : > { %v2079_v20 = vpop.f32.mrf.mxu1 }
 0x16e   : > { %v2084_v21 = vmax.f32 %v2082_v15, %v2083_v18 }
 0x170   : > { %v2085_v22 = vpack.c.bf16 %v2084_v21, %v2084_v21 }
 0x172   : > { %2810 = vst [vmem:[%s3565_s15 + $0x18] sm:$0xf] %v2085_v22  ;;  %v2114_v23 = vpop.f32.mrf.mxu2 }
 0x173   : > { %v2131_v24 = vpop.f32.mrf.mxu3 }
 0x174   : > { %v2151_v25 = vpop.f32.mrf.mxu0  ;;  %v2132_v27 = vadd.f32 %v2131_v24, %v2112_v16 }
 0x175   : > { %v2184_v26 = vpop.f32.mrf.mxu1 }
 0x176   : > { %v2155_v30 = vadd.f32 %v2151_v25, %v2132_v27 }
 0x178   : > { %v2188_v33 = vadd.f32 %v2184_v26, %v2155_v30 }
 0x17a   : > { %v2217_v28 = vpop.f32.mrf.mxu2 }
 0x17b   : > { %v2133_v29 = vpop.f32.mrf.mxu3  ;;  %v2221_v34 = vadd.f32 %v2217_v28, %v2188_v33 }
 0x17c   : > { %v2153_v31 = vpop.f32.mrf.mxu0 }
 0x17d   : > { %v2186_v32 = vpop.f32.mrf.mxu1 }
 0x182   : > { %v2219_v35 = vpop.f32.mrf.mxu2 }
 0x183   : > { %v2250_v37 = vpop.f32.mrf.mxu3 }
 0x184   : > { %v2254_v38 = vadd.f32 %v2250_v37, %v2221_v34 }
 0x186   : > { %v2255_v39 = vadd.f32 %v3549_v36, %v2254_v38 }
 0x188   : > { %v2256_v40 = vmul.f32 0.1, %v2255_v39 }
 0x18a   : > { %v2257_v41 = vmax.f32 %v2255_v39, %v2256_v40 }
 0x18b   : > { %v2252_v42 = vpop.f32.mrf.mxu3 }
 0x18c   : > { %v2258_v43 = vpack.c.bf16 %v2257_v41, %v2257_v41 }
 0x18e   : > { %2837 = vst [vmem:[%s3565_s15 + $0x1c] sm:$0xf] %v2258_v43 }
 0x18f PF: > { %s16_s25 = sadd.s32 1, %s3045_s25   ;;  %s3626_s21 = smov %s3033_s22 }
 0x190   : > { %p13_p12 = scmp.ge.s32.totalorder %s16_s25, 4   ;;  %s3627_s22 = smov %s3133_s30 }
 0x191   : > { %s3628_s23 = smov %s3041_s24  ;;  %s3629_s24 = smov %s3631_s26 }
 0x192   :  { %15 = sbr.rel (!%p13_p12) target bundleno = 3 (0x3), region = 320 }

</bundles_post_ra>
